<compile_context>
chip_gen: v5e
topology: v5e:2x2
jax: 0.10.0
libtpu: 0.0.40
codegen_flags: <defaults>
</compile_context>

<pallas_src>
import functools

import jax
import jax.numpy as jnp
from jax.experimental import pallas as pl
from jax.experimental.pallas import tpu as pltpu

EPS = 1e-5
_ALIGN = 128


# ------------------------------ fused kernel ------------------------------- #

def _fused_cnn_kernel(x_ref, prm_ref, o_ref, *, n, h, w, ch, c2, dout,
                      off_w1, off_w2, off_w3, off_wds, off_w4, off_fcw,
                      off_b, off_m):
    f32 = jnp.float32
    s = h * w
    ns = n * s

    # ---- static carve-outs of the single packed parameter slab ------------ #
    w1 = prm_ref[0:ch, off_w1:off_w1 + 9]               # (ch, 9)      BN-folded
    w2 = prm_ref[0:ch, off_w2:off_w2 + 9 * ch]          # (ch, 9*ch)
    w3 = prm_ref[0:c2, off_w3:off_w3 + 9 * ch]          # (c2, 9*ch)
    wds = prm_ref[0:c2, off_wds:off_wds + ch]           # (c2, ch)   1x1 + BN
    w4 = prm_ref[0:c2, off_w4:off_w4 + 9 * c2]          # (c2, 9*c2)
    fcw = prm_ref[0:dout, off_fcw:off_fcw + c2]         # (dout, c2)
    b1 = prm_ref[0:ch, off_b + 0:off_b + 1]
    b2 = prm_ref[0:ch, off_b + 1:off_b + 2]
    b3 = prm_ref[0:c2, off_b + 2:off_b + 3]
    bds = prm_ref[0:c2, off_b + 3:off_b + 4]
    b4 = prm_ref[0:c2, off_b + 4:off_b + 5]
    fcb = prm_ref[0:dout, off_b + 5:off_b + 6]
    mask9 = prm_ref[0:9, off_m:off_m + ns]              # (9, ns) tap validity

    def tap_rows(act):
        """act: (Cin, NS) -> list of 9 masked, shifted rows (tap-major order).

        Tap (dy, dx) reads flattened position t + (dy-1)*w + (dx-1); the roll
        wrap-around and any cross-row / cross-image bleed are zeroed by the
        precomputed validity mask (padding == 0 exactly).
        """
        base = (pltpu.roll(act, shift=w % ns, axis=1),           # dy = 0
                act,                                             # dy = 1
                pltpu.roll(act, shift=(ns - w) % ns, axis=1))    # dy = 2
        rows = []
        for dy in range(3):
            for dx in range(3):
                if dx == 1:
                    r = base[dy]
                elif dx == 0:
                    r = pltpu.roll(base[dy], shift=1, axis=1)
                else:
                    r = pltpu.roll(base[dy], shift=ns - 1, axis=1)
                if dy == 1 and dx == 1:
                    rows.append(r)                               # center: no pad
                else:
                    k = dy * 3 + dx
                    rows.append(r * mask9[k:k + 1, :])
        return rows

    def conv_bn(act, wmat, bias, cin):
        """3x3 conv (pad=1) + folded eval-BN, channel-major (Cout, NS)."""
        taps = tap_rows(act)
        if cin == 1:
            # K=9 is too small to feed the MXU usefully; VPU outer products.
            acc = wmat[:, 0:1] * taps[0]
            for k in range(1, 9):
                acc = acc + wmat[:, k:k + 1] * taps[k]
            return acc + bias
        patches = jnp.concatenate(taps, axis=0)                  # (9*cin, ns)
        return jnp.dot(wmat, patches, preferred_element_type=f32) + bias

    x = x_ref[...]                                               # (1, NS)

    # ----- block1: ResidualBlock2D(1 -> hidden), no downsample ----- #
    a1 = jnp.maximum(conv_bn(x, w1, b1, 1), 0.0)
    # TODO(synk): nn.Dropout2d is identity at inference; training-mode channel
    # dropout is not implemented.
    out1 = jnp.maximum(conv_bn(a1, w2, b2, ch) + x, 0.0)         # 1-ch residual bcast

    # ----- block2: ResidualBlock2D(hidden -> 2*hidden), 1x1 conv + BN downsample --- #
    a2 = jnp.maximum(conv_bn(out1, w3, b3, ch), 0.0)
    res = jnp.dot(wds, out1, preferred_element_type=f32) + bds
    out2 = jnp.maximum(conv_bn(a2, w4, b4, c2) + res, 0.0)       # (c2, ns)

    # ----- global average pool (segmented lane reduce per image) + FC ----- #
    cols = [jnp.sum(out2[:, bi * s:(bi + 1) * s], axis=1, keepdims=True)
            for bi in range(n)]
    pooled = jnp.concatenate(cols, axis=1) * jnp.float32(1.0 / s)  # (c2, n)
    o_ref[...] = jnp.dot(fcw, pooled, preferred_element_type=f32) + fcb


# ------------------------------ call wrapper -------------------------------- #

def _fold_conv3x3_bn(w_hwio, bn):
    """HWIO (3,3,Cin,Cout) conv + eval BN -> ((Cout, 9*Cin), (Cout,1)).

    K ordering is tap-major then Cin, matching the im2col patch rows.
    """
    gamma, beta, mean, var = bn
    scale = gamma / jnp.sqrt(var + EPS)
    bias = beta - mean * scale
    kh, kw, cin, cout = w_hwio.shape
    w_flat = jnp.transpose(w_hwio, (3, 0, 1, 2)).reshape(cout, kh * kw * cin)
    return w_flat * scale[:, None], bias[:, None]


def _fold_conv1x1_bn(w_io, bn):
    """(Cin,Cout) 1x1 conv + eval BN -> ((Cout,Cin), (Cout,1))."""
    gamma, beta, mean, var = bn
    scale = gamma / jnp.sqrt(var + EPS)
    bias = beta - mean * scale
    return w_io.T * scale[:, None], bias[:, None]


def _make_tap_mask(n, h, w):
    """(9, N*H*W) validity mask: row dy*3+dx is 1 where (y+dy-1, x+dx-1) is inside."""
    s = h * w
    t = jnp.arange(n * s)
    yy = (t // w) % h
    xx = t % w
    rows = []
    for dy in range(3):
        for dx in range(3):
            valid = ((yy + dy - 1 >= 0) & (yy + dy - 1 < h) &
                     (xx + dx - 1 >= 0) & (xx + dx - 1 < w))
            rows.append(valid.astype(jnp.float32))
    return jnp.stack(rows, axis=0)


def cnn_model_2d_forward(x_nchw, p):
    n, cin, h, w = x_nchw.shape
    assert cin == 1, "CNNModel2D block1 takes single-channel input"
    s = h * w
    ns = n * s
    ch = p["b1_conv1"].shape[-1]
    c2 = p["b2_conv1"].shape[-1]
    dout = p["fc_w"].shape[0]

    # Channel-major, batch+spatial flattened onto the lane axis: (1, N*H*W).
    x_flat = x_nchw.astype(jnp.float32).reshape(1, ns)

    w1, b1 = _fold_conv3x3_bn(p["b1_conv1"], p["b1_bn1"])
    w2, b2 = _fold_conv3x3_bn(p["b1_conv2"], p["b1_bn2"])
    w3, b3 = _fold_conv3x3_bn(p["b2_conv1"], p["b2_bn1"])
    w4, b4 = _fold_conv3x3_bn(p["b2_conv2"], p["b2_bn2"])
    wds, bds = _fold_conv1x1_bn(p["b2_conv_ds"], p["b2_bn_ds"])
    fcw = p["fc_w"].astype(jnp.float32)                           # (dout, c2)
    fcb = p["fc_b"].astype(jnp.float32)[:, None]                  # (dout, 1)
    mask9 = _make_tap_mask(n, h, w)                               # (9, ns)

    # ---- pack everything into one lane-aligned f32 slab (one DMA) ---------- #
    rows = ((max(ch, c2, dout, 9) + 7) // 8) * 8

    def _col(v):
        return jnp.pad(v, ((0, rows - v.shape[0]), (0, 0)))

    bias_blk = jnp.concatenate(
        [_col(b1), _col(b2), _col(b3), _col(bds), _col(b4), _col(fcb)], axis=1)

    blocks = [w1, w2, w3, wds, w4, fcw, bias_blk, mask9]
    offs, col = [], 0
    for blk in blocks:
        offs.append(col)
        col += -(-blk.shape[1] // _ALIGN) * _ALIGN
    slab = jnp.zeros((rows, col), jnp.float32)
    for off, blk in zip(offs, blocks):
        slab = slab.at[:blk.shape[0], off:off + blk.shape[1]].set(blk)
    off_w1, off_w2, off_w3, off_wds, off_w4, off_fcw, off_b, off_m = offs

    flops = (2 * ns * (9 * 1 * ch + 9 * ch * ch + 9 * ch * c2 + ch * c2
                       + 9 * c2 * c2) + 2 * c2 * ns + 2 * n * c2 * dout)
    bytes_accessed = 4 * (int(x_flat.size) + int(slab.size) + dout * n)

    kern = functools.partial(
        _fused_cnn_kernel, n=n, h=h, w=w, ch=ch, c2=c2, dout=dout,
        off_w1=off_w1, off_w2=off_w2, off_w3=off_w3, off_wds=off_wds,
        off_w4=off_w4, off_fcw=off_fcw, off_b=off_b, off_m=off_m)

    # TODO(synk): add a parallel whole-image batch grid (dimension_semantics=
    # ("parallel",)) for v7x's 2 TensorCores / its 64 MiB VMEM once N is large.
    vmem = pltpu.MemorySpace.VMEM
    out_t = pl.pallas_call(
        kern,
        out_shape=jax.ShapeDtypeStruct((dout, n), jnp.float32),
        in_specs=[pl.BlockSpec(memory_space=vmem),
                  pl.BlockSpec(memory_space=vmem)],
        out_specs=pl.BlockSpec(memory_space=vmem),
        cost_estimate=pl.CostEstimate(flops=flops, transcendentals=0,
                                      bytes_accessed=bytes_accessed),
    )(x_flat, slab)
    return out_t.T                                                # (N, dout)


# ----------------------- params + pure-JAX reference ----------------------- #

def init_params(key, hidden, out_size):
    ks = jax.random.split(key, 12)

    def conv_w(k, kh, kw, cin, cout):
        bound = 1.0 / jnp.sqrt(float(cin * kh * kw))
        return jax.random.uniform(k, (kh, kw, cin, cout), jnp.float32, -bound, bound)

    def bn_p(k, c):
        k1, k2, k3, k4 = jax.random.split(k, 4)
        gamma = jax.random.uniform(k1, (c,), jnp.float32, 0.5, 1.5)
        beta = 0.1 * jax.random.normal(k2, (c,), jnp.float32)
        mean = 0.1 * jax.random.normal(k3, (c,), jnp.float32)
        var = jax.random.uniform(k4, (c,), jnp.float32, 0.5, 1.5)
        return gamma, beta, mean, var

    h2 = hidden * 2
    fcb = 1.0 / jnp.sqrt(float(h2))
    return {
        "b1_conv1": conv_w(ks[0], 3, 3, 1, hidden),
        "b1_bn1": bn_p(ks[1], hidden),
        "b1_conv2": conv_w(ks[2], 3, 3, hidden, hidden),
        "b1_bn2": bn_p(ks[3], hidden),
        "b2_conv1": conv_w(ks[4], 3, 3, hidden, h2),
        "b2_bn1": bn_p(ks[5], h2),
        "b2_conv2": conv_w(ks[6], 3, 3, h2, h2),
        "b2_bn2": bn_p(ks[7], h2),
        "b2_conv_ds": conv_w(ks[8], 1, 1, hidden, h2).reshape(hidden, h2),
        "b2_bn_ds": bn_p(ks[9], h2),
        "fc_w": jax.random.uniform(ks[10], (out_size, h2), jnp.float32, -fcb, fcb),
        "fc_b": jax.random.uniform(ks[11], (out_size,), jnp.float32, -fcb, fcb),
    }


def ref_forward(x_nchw, p):
    dn = ("NHWC", "HWIO", "NHWC")
    x = jnp.transpose(x_nchw, (0, 2, 3, 1)).astype(jnp.float32)

    def conv(a, w, pad):
        return jax.lax.conv_general_dilated(a, w, (1, 1),
                                            [(pad, pad), (pad, pad)],
                                            dimension_numbers=dn)

    def bn(a, prm):
        g, bt, m, v = prm
        return (a - m) / jnp.sqrt(v + EPS) * g + bt

    out = jax.nn.relu(bn(conv(x, p["b1_conv1"], 1), p["b1_bn1"]))
    out = jax.nn.relu(bn(conv(out, p["b1_conv2"], 1), p["b1_bn2"]) + x)
    h = jax.nn.relu(bn(conv(out, p["b2_conv1"], 1), p["b2_bn1"]))
    cin, cout = p["b2_conv_ds"].shape
    res = bn(conv(out, p["b2_conv_ds"].reshape(1, 1, cin, cout), 0), p["b2_bn_ds"])
    out2 = jax.nn.relu(bn(conv(h, p["b2_conv2"], 1), p["b2_bn2"]) + res)
    pooled = out2.mean(axis=(1, 2))
    return pooled @ p["fc_w"].T + p["fc_b"]


# ----------------------------------- main ----------------------------------- #

if __name__ == "__main__":
    N, H, W = 2, 16, 16
    config = {"hidden_size": 8, "dropout": 0.1, "output_size": 10}

    key = jax.random.PRNGKey(0)
    kx, kp = jax.random.split(key)
    x = jax.random.normal(kx, (N, 1, H, W), jnp.float32)          # NCHW, like PyTorch
    params = init_params(kp, config["hidden_size"], config["output_size"])

    fwd = jax.jit(cnn_model_2d_forward)
    y = jax.block_until_ready(fwd(x, params))

    y_ref = ref_forward(x, params)
    assert y.shape == (N, config["output_size"])
    assert jnp.allclose(y, y_ref, atol=1e-3, rtol=1e-3), (
        f"mismatch: max abs err {jnp.max(jnp.abs(y - y_ref))}")

    print("KERNEL_OK")
</pallas_src>

<mosaic_0001>
module attributes {stable_mosaic.version = 11 : i64} {
  func.func @_fused_cnn_kernel(%arg0: memref<1x512xf32, #tpu.memory_space<vmem>>, %arg1: memref<16x1536xf32, #tpu.memory_space<vmem>>, %arg2: memref<10x2xf32, #tpu.memory_space<vmem>>) attributes {dimension_semantics = [], scalar_prefetch = 0 : i64, scratch_operands = 0 : i64, tpu.core_type = #tpu.core_type<tc>} {
    %c0 = arith.constant 0 : index
    %c0_0 = arith.constant 0 : index
    %0 = vector.load %arg1[%c0, %c0_0] : memref<16x1536xf32, #tpu.memory_space<vmem>>, vector<8x9xf32>
    %c0_1 = arith.constant 0 : index
    %c128 = arith.constant 128 : index
    %1 = vector.load %arg1[%c0_1, %c128] : memref<16x1536xf32, #tpu.memory_space<vmem>>, vector<8x72xf32>
    %c0_2 = arith.constant 0 : index
    %c256 = arith.constant 256 : index
    %2 = vector.load %arg1[%c0_2, %c256] : memref<16x1536xf32, #tpu.memory_space<vmem>>, vector<16x72xf32>
    %c0_3 = arith.constant 0 : index
    %c384 = arith.constant 384 : index
    %3 = vector.load %arg1[%c0_3, %c384] : memref<16x1536xf32, #tpu.memory_space<vmem>>, vector<16x8xf32>
    %c0_4 = arith.constant 0 : index
    %c512 = arith.constant 512 : index
    %4 = vector.load %arg1[%c0_4, %c512] : memref<16x1536xf32, #tpu.memory_space<vmem>>, vector<16x144xf32>
    %c0_5 = arith.constant 0 : index
    %c768 = arith.constant 768 : index
    %5 = vector.load %arg1[%c0_5, %c768] : memref<16x1536xf32, #tpu.memory_space<vmem>>, vector<10x16xf32>
    %c0_6 = arith.constant 0 : index
    %c896 = arith.constant 896 : index
    %6 = vector.load %arg1[%c0_6, %c896] : memref<16x1536xf32, #tpu.memory_space<vmem>>, vector<8x1xf32>
    %c0_7 = arith.constant 0 : index
    %c897 = arith.constant 897 : index
    %7 = vector.load %arg1[%c0_7, %c897] : memref<16x1536xf32, #tpu.memory_space<vmem>>, vector<8x1xf32>
    %c0_8 = arith.constant 0 : index
    %c898 = arith.constant 898 : index
    %8 = vector.load %arg1[%c0_8, %c898] : memref<16x1536xf32, #tpu.memory_space<vmem>>, vector<16x1xf32>
    %c0_9 = arith.constant 0 : index
    %c899 = arith.constant 899 : index
    %9 = vector.load %arg1[%c0_9, %c899] : memref<16x1536xf32, #tpu.memory_space<vmem>>, vector<16x1xf32>
    %c0_10 = arith.constant 0 : index
    %c900 = arith.constant 900 : index
    %10 = vector.load %arg1[%c0_10, %c900] : memref<16x1536xf32, #tpu.memory_space<vmem>>, vector<16x1xf32>
    %c0_11 = arith.constant 0 : index
    %c901 = arith.constant 901 : index
    %11 = vector.load %arg1[%c0_11, %c901] : memref<16x1536xf32, #tpu.memory_space<vmem>>, vector<10x1xf32>
    %c0_12 = arith.constant 0 : index
    %c1024 = arith.constant 1024 : index
    %12 = vector.load %arg1[%c0_12, %c1024] : memref<16x1536xf32, #tpu.memory_space<vmem>>, vector<9x512xf32>
    %c0_13 = arith.constant 0 : index
    %c0_14 = arith.constant 0 : index
    %13 = vector.load %arg0[%c0_13, %c0_14] : memref<1x512xf32, #tpu.memory_space<vmem>>, vector<1x512xf32>
    %c16_i32 = arith.constant 16 : i32
    %14 = tpu.dynamic_rotate %13 by %c16_i32 dim 1 : vector<1x512xf32>, i32 -> vector<1x512xf32>
    %c496_i32 = arith.constant 496 : i32
    %15 = tpu.dynamic_rotate %13 by %c496_i32 dim 1 : vector<1x512xf32>, i32 -> vector<1x512xf32>
    %c1_i32 = arith.constant 1 : i32
    %16 = tpu.dynamic_rotate %14 by %c1_i32 dim 1 : vector<1x512xf32>, i32 -> vector<1x512xf32>
    %17 = vector.extract_strided_slice %12 {offsets = [0, 0], sizes = [1, 512], strides = [1, 1]} : vector<9x512xf32> to vector<1x512xf32>
    %18 = arith.mulf %16, %17 : vector<1x512xf32>
    %19 = vector.extract_strided_slice %12 {offsets = [1, 0], sizes = [1, 512], strides = [1, 1]} : vector<9x512xf32> to vector<1x512xf32>
    %20 = arith.mulf %14, %19 : vector<1x512xf32>
    %c511_i32 = arith.constant 511 : i32
    %21 = tpu.dynamic_rotate %14 by %c511_i32 dim 1 : vector<1x512xf32>, i32 -> vector<1x512xf32>
    %22 = vector.extract_strided_slice %12 {offsets = [2, 0], sizes = [1, 512], strides = [1, 1]} : vector<9x512xf32> to vector<1x512xf32>
    %23 = arith.mulf %21, %22 : vector<1x512xf32>
    %c1_i32_15 = arith.constant 1 : i32
    %24 = tpu.dynamic_rotate %13 by %c1_i32_15 dim 1 : vector<1x512xf32>, i32 -> vector<1x512xf32>
    %25 = vector.extract_strided_slice %12 {offsets = [3, 0], sizes = [1, 512], strides = [1, 1]} : vector<9x512xf32> to vector<1x512xf32>
    %26 = arith.mulf %24, %25 : vector<1x512xf32>
    %c511_i32_16 = arith.constant 511 : i32
    %27 = tpu.dynamic_rotate %13 by %c511_i32_16 dim 1 : vector<1x512xf32>, i32 -> vector<1x512xf32>
    %28 = vector.extract_strided_slice %12 {offsets = [5, 0], sizes = [1, 512], strides = [1, 1]} : vector<9x512xf32> to vector<1x512xf32>
    %29 = arith.mulf %27, %28 : vector<1x512xf32>
    %c1_i32_17 = arith.constant 1 : i32
    %30 = tpu.dynamic_rotate %15 by %c1_i32_17 dim 1 : vector<1x512xf32>, i32 -> vector<1x512xf32>
    %31 = vector.extract_strided_slice %12 {offsets = [6, 0], sizes = [1, 512], strides = [1, 1]} : vector<9x512xf32> to vector<1x512xf32>
    %32 = arith.mulf %30, %31 : vector<1x512xf32>
    %33 = vector.extract_strided_slice %12 {offsets = [7, 0], sizes = [1, 512], strides = [1, 1]} : vector<9x512xf32> to vector<1x512xf32>
    %34 = arith.mulf %15, %33 : vector<1x512xf32>
    %c511_i32_18 = arith.constant 511 : i32
    %35 = tpu.dynamic_rotate %15 by %c511_i32_18 dim 1 : vector<1x512xf32>, i32 -> vector<1x512xf32>
    %36 = vector.extract_strided_slice %12 {offsets = [8, 0], sizes = [1, 512], strides = [1, 1]} : vector<9x512xf32> to vector<1x512xf32>
    %37 = arith.mulf %35, %36 : vector<1x512xf32>
    %38 = vector.extract_strided_slice %0 {offsets = [0, 0], sizes = [8, 1], strides = [1, 1]} : vector<8x9xf32> to vector<8x1xf32>
    %39 = vector.broadcast %38 : vector<8x1xf32> to vector<8x512xf32>
    %40 = vector.broadcast %18 : vector<1x512xf32> to vector<8x512xf32>
    %41 = arith.mulf %39, %40 : vector<8x512xf32>
    %42 = vector.extract_strided_slice %0 {offsets = [0, 1], sizes = [8, 1], strides = [1, 1]} : vector<8x9xf32> to vector<8x1xf32>
    %43 = vector.broadcast %42 : vector<8x1xf32> to vector<8x512xf32>
    %44 = vector.broadcast %20 : vector<1x512xf32> to vector<8x512xf32>
    %45 = arith.mulf %43, %44 : vector<8x512xf32>
    %46 = arith.addf %41, %45 : vector<8x512xf32>
    %47 = vector.extract_strided_slice %0 {offsets = [0, 2], sizes = [8, 1], strides = [1, 1]} : vector<8x9xf32> to vector<8x1xf32>
    %48 = vector.broadcast %47 : vector<8x1xf32> to vector<8x512xf32>
    %49 = vector.broadcast %23 : vector<1x512xf32> to vector<8x512xf32>
    %50 = arith.mulf %48, %49 : vector<8x512xf32>
    %51 = arith.addf %46, %50 : vector<8x512xf32>
    %52 = vector.extract_strided_slice %0 {offsets = [0, 3], sizes = [8, 1], strides = [1, 1]} : vector<8x9xf32> to vector<8x1xf32>
    %53 = vector.broadcast %52 : vector<8x1xf32> to vector<8x512xf32>
    %54 = vector.broadcast %26 : vector<1x512xf32> to vector<8x512xf32>
    %55 = arith.mulf %53, %54 : vector<8x512xf32>
    %56 = arith.addf %51, %55 : vector<8x512xf32>
    %57 = vector.extract_strided_slice %0 {offsets = [0, 4], sizes = [8, 1], strides = [1, 1]} : vector<8x9xf32> to vector<8x1xf32>
    %58 = vector.broadcast %57 : vector<8x1xf32> to vector<8x512xf32>
    %59 = vector.broadcast %13 : vector<1x512xf32> to vector<8x512xf32>
    %60 = arith.mulf %58, %59 : vector<8x512xf32>
    %61 = arith.addf %56, %60 : vector<8x512xf32>
    %62 = vector.extract_strided_slice %0 {offsets = [0, 5], sizes = [8, 1], strides = [1, 1]} : vector<8x9xf32> to vector<8x1xf32>
    %63 = vector.broadcast %62 : vector<8x1xf32> to vector<8x512xf32>
    %64 = vector.broadcast %29 : vector<1x512xf32> to vector<8x512xf32>
    %65 = arith.mulf %63, %64 : vector<8x512xf32>
    %66 = arith.addf %61, %65 : vector<8x512xf32>
    %67 = vector.extract_strided_slice %0 {offsets = [0, 6], sizes = [8, 1], strides = [1, 1]} : vector<8x9xf32> to vector<8x1xf32>
    %68 = vector.broadcast %67 : vector<8x1xf32> to vector<8x512xf32>
    %69 = vector.broadcast %32 : vector<1x512xf32> to vector<8x512xf32>
    %70 = arith.mulf %68, %69 : vector<8x512xf32>
    %71 = arith.addf %66, %70 : vector<8x512xf32>
    %72 = vector.extract_strided_slice %0 {offsets = [0, 7], sizes = [8, 1], strides = [1, 1]} : vector<8x9xf32> to vector<8x1xf32>
    %73 = vector.broadcast %72 : vector<8x1xf32> to vector<8x512xf32>
    %74 = vector.broadcast %34 : vector<1x512xf32> to vector<8x512xf32>
    %75 = arith.mulf %73, %74 : vector<8x512xf32>
    %76 = arith.addf %71, %75 : vector<8x512xf32>
    %77 = vector.extract_strided_slice %0 {offsets = [0, 8], sizes = [8, 1], strides = [1, 1]} : vector<8x9xf32> to vector<8x1xf32>
    %78 = vector.broadcast %77 : vector<8x1xf32> to vector<8x512xf32>
    %79 = vector.broadcast %37 : vector<1x512xf32> to vector<8x512xf32>
    %80 = arith.mulf %78, %79 : vector<8x512xf32>
    %81 = arith.addf %76, %80 : vector<8x512xf32>
    %82 = vector.broadcast %6 : vector<8x1xf32> to vector<8x512xf32>
    %83 = arith.addf %81, %82 : vector<8x512xf32>
    %cst = arith.constant 0.000000e+00 : f32
    %84 = vector.broadcast %cst : f32 to vector<8x512xf32>
    %85 = arith.maximumf %83, %84 : vector<8x512xf32>
    %c16_i32_19 = arith.constant 16 : i32
    %86 = tpu.dynamic_rotate %85 by %c16_i32_19 dim 1 : vector<8x512xf32>, i32 -> vector<8x512xf32>
    %c496_i32_20 = arith.constant 496 : i32
    %87 = tpu.dynamic_rotate %85 by %c496_i32_20 dim 1 : vector<8x512xf32>, i32 -> vector<8x512xf32>
    %c1_i32_21 = arith.constant 1 : i32
    %88 = tpu.dynamic_rotate %86 by %c1_i32_21 dim 1 : vector<8x512xf32>, i32 -> vector<8x512xf32>
    %89 = vector.extract_strided_slice %12 {offsets = [0, 0], sizes = [1, 512], strides = [1, 1]} : vector<9x512xf32> to vector<1x512xf32>
    %90 = vector.broadcast %89 : vector<1x512xf32> to vector<8x512xf32>
    %91 = arith.mulf %88, %90 : vector<8x512xf32>
    %92 = vector.extract_strided_slice %12 {offsets = [1, 0], sizes = [1, 512], strides = [1, 1]} : vector<9x512xf32> to vector<1x512xf32>
    %93 = vector.broadcast %92 : vector<1x512xf32> to vector<8x512xf32>
    %94 = arith.mulf %86, %93 : vector<8x512xf32>
    %c511_i32_22 = arith.constant 511 : i32
    %95 = tpu.dynamic_rotate %86 by %c511_i32_22 dim 1 : vector<8x512xf32>, i32 -> vector<8x512xf32>
    %96 = vector.extract_strided_slice %12 {offsets = [2, 0], sizes = [1, 512], strides = [1, 1]} : vector<9x512xf32> to vector<1x512xf32>
    %97 = vector.broadcast %96 : vector<1x512xf32> to vector<8x512xf32>
    %98 = arith.mulf %95, %97 : vector<8x512xf32>
    %c1_i32_23 = arith.constant 1 : i32
    %99 = tpu.dynamic_rotate %85 by %c1_i32_23 dim 1 : vector<8x512xf32>, i32 -> vector<8x512xf32>
    %100 = vector.extract_strided_slice %12 {offsets = [3, 0], sizes = [1, 512], strides = [1, 1]} : vector<9x512xf32> to vector<1x512xf32>
    %101 = vector.broadcast %100 : vector<1x512xf32> to vector<8x512xf32>
    %102 = arith.mulf %99, %101 : vector<8x512xf32>
    %c511_i32_24 = arith.constant 511 : i32
    %103 = tpu.dynamic_rotate %85 by %c511_i32_24 dim 1 : vector<8x512xf32>, i32 -> vector<8x512xf32>
    %104 = vector.extract_strided_slice %12 {offsets = [5, 0], sizes = [1, 512], strides = [1, 1]} : vector<9x512xf32> to vector<1x512xf32>
    %105 = vector.broadcast %104 : vector<1x512xf32> to vector<8x512xf32>
    %106 = arith.mulf %103, %105 : vector<8x512xf32>
    %c1_i32_25 = arith.constant 1 : i32
    %107 = tpu.dynamic_rotate %87 by %c1_i32_25 dim 1 : vector<8x512xf32>, i32 -> vector<8x512xf32>
    %108 = vector.extract_strided_slice %12 {offsets = [6, 0], sizes = [1, 512], strides = [1, 1]} : vector<9x512xf32> to vector<1x512xf32>
    %109 = vector.broadcast %108 : vector<1x512xf32> to vector<8x512xf32>
    %110 = arith.mulf %107, %109 : vector<8x512xf32>
    %111 = vector.extract_strided_slice %12 {offsets = [7, 0], sizes = [1, 512], strides = [1, 1]} : vector<9x512xf32> to vector<1x512xf32>
    %112 = vector.broadcast %111 : vector<1x512xf32> to vector<8x512xf32>
    %113 = arith.mulf %87, %112 : vector<8x512xf32>
    %c511_i32_26 = arith.constant 511 : i32
    %114 = tpu.dynamic_rotate %87 by %c511_i32_26 dim 1 : vector<8x512xf32>, i32 -> vector<8x512xf32>
    %115 = vector.extract_strided_slice %12 {offsets = [8, 0], sizes = [1, 512], strides = [1, 1]} : vector<9x512xf32> to vector<1x512xf32>
    %116 = vector.broadcast %115 : vector<1x512xf32> to vector<8x512xf32>
    %117 = arith.mulf %114, %116 : vector<8x512xf32>
    %118 = tpu.concatenate %91, %94, %98, %102, %85, %106, %110, %113, %117 in 0 : vector<8x512xf32>, vector<8x512xf32>, vector<8x512xf32>, vector<8x512xf32>, vector<8x512xf32>, vector<8x512xf32>, vector<8x512xf32>, vector<8x512xf32>, vector<8x512xf32> -> vector<72x512xf32>
    %cst_27 = arith.constant dense<0.000000e+00> : vector<8x512xf32>
    %119 = tpu.matmul %1, %118, %cst_27 {dimension_numbers = #tpu.dot_dimension_numbers<[1], [0], [0], [1], [0, 0, 1, 1], [], []>} : vector<8x72xf32>, vector<72x512xf32>, vector<8x512xf32> -> vector<8x512xf32>
    %120 = vector.broadcast %7 : vector<8x1xf32> to vector<8x512xf32>
    %121 = arith.addf %119, %120 : vector<8x512xf32>
    %122 = vector.broadcast %13 : vector<1x512xf32> to vector<8x512xf32>
    %123 = arith.addf %121, %122 : vector<8x512xf32>
    %cst_28 = arith.constant 0.000000e+00 : f32
    %124 = vector.broadcast %cst_28 : f32 to vector<8x512xf32>
    %125 = arith.maximumf %123, %124 : vector<8x512xf32>
    %c16_i32_29 = arith.constant 16 : i32
    %126 = tpu.dynamic_rotate %125 by %c16_i32_29 dim 1 : vector<8x512xf32>, i32 -> vector<8x512xf32>
    %c496_i32_30 = arith.constant 496 : i32
    %127 = tpu.dynamic_rotate %125 by %c496_i32_30 dim 1 : vector<8x512xf32>, i32 -> vector<8x512xf32>
    %c1_i32_31 = arith.constant 1 : i32
    %128 = tpu.dynamic_rotate %126 by %c1_i32_31 dim 1 : vector<8x512xf32>, i32 -> vector<8x512xf32>
    %129 = vector.extract_strided_slice %12 {offsets = [0, 0], sizes = [1, 512], strides = [1, 1]} : vector<9x512xf32> to vector<1x512xf32>
    %130 = vector.broadcast %129 : vector<1x512xf32> to vector<8x512xf32>
    %131 = arith.mulf %128, %130 : vector<8x512xf32>
    %132 = vector.extract_strided_slice %12 {offsets = [1, 0], sizes = [1, 512], strides = [1, 1]} : vector<9x512xf32> to vector<1x512xf32>
    %133 = vector.broadcast %132 : vector<1x512xf32> to vector<8x512xf32>
    %134 = arith.mulf %126, %133 : vector<8x512xf32>
    %c511_i32_32 = arith.constant 511 : i32
    %135 = tpu.dynamic_rotate %126 by %c511_i32_32 dim 1 : vector<8x512xf32>, i32 -> vector<8x512xf32>
    %136 = vector.extract_strided_slice %12 {offsets = [2, 0], sizes = [1, 512], strides = [1, 1]} : vector<9x512xf32> to vector<1x512xf32>
    %137 = vector.broadcast %136 : vector<1x512xf32> to vector<8x512xf32>
    %138 = arith.mulf %135, %137 : vector<8x512xf32>
    %c1_i32_33 = arith.constant 1 : i32
    %139 = tpu.dynamic_rotate %125 by %c1_i32_33 dim 1 : vector<8x512xf32>, i32 -> vector<8x512xf32>
    %140 = vector.extract_strided_slice %12 {offsets = [3, 0], sizes = [1, 512], strides = [1, 1]} : vector<9x512xf32> to vector<1x512xf32>
    %141 = vector.broadcast %140 : vector<1x512xf32> to vector<8x512xf32>
    %142 = arith.mulf %139, %141 : vector<8x512xf32>
    %c511_i32_34 = arith.constant 511 : i32
    %143 = tpu.dynamic_rotate %125 by %c511_i32_34 dim 1 : vector<8x512xf32>, i32 -> vector<8x512xf32>
    %144 = vector.extract_strided_slice %12 {offsets = [5, 0], sizes = [1, 512], strides = [1, 1]} : vector<9x512xf32> to vector<1x512xf32>
    %145 = vector.broadcast %144 : vector<1x512xf32> to vector<8x512xf32>
    %146 = arith.mulf %143, %145 : vector<8x512xf32>
    %c1_i32_35 = arith.constant 1 : i32
    %147 = tpu.dynamic_rotate %127 by %c1_i32_35 dim 1 : vector<8x512xf32>, i32 -> vector<8x512xf32>
    %148 = vector.extract_strided_slice %12 {offsets = [6, 0], sizes = [1, 512], strides = [1, 1]} : vector<9x512xf32> to vector<1x512xf32>
    %149 = vector.broadcast %148 : vector<1x512xf32> to vector<8x512xf32>
    %150 = arith.mulf %147, %149 : vector<8x512xf32>
    %151 = vector.extract_strided_slice %12 {offsets = [7, 0], sizes = [1, 512], strides = [1, 1]} : vector<9x512xf32> to vector<1x512xf32>
    %152 = vector.broadcast %151 : vector<1x512xf32> to vector<8x512xf32>
    %153 = arith.mulf %127, %152 : vector<8x512xf32>
    %c511_i32_36 = arith.constant 511 : i32
    %154 = tpu.dynamic_rotate %127 by %c511_i32_36 dim 1 : vector<8x512xf32>, i32 -> vector<8x512xf32>
    %155 = vector.extract_strided_slice %12 {offsets = [8, 0], sizes = [1, 512], strides = [1, 1]} : vector<9x512xf32> to vector<1x512xf32>
    %156 = vector.broadcast %155 : vector<1x512xf32> to vector<8x512xf32>
    %157 = arith.mulf %154, %156 : vector<8x512xf32>
    %158 = tpu.concatenate %131, %134, %138, %142, %125, %146, %150, %153, %157 in 0 : vector<8x512xf32>, vector<8x512xf32>, vector<8x512xf32>, vector<8x512xf32>, vector<8x512xf32>, vector<8x512xf32>, vector<8x512xf32>, vector<8x512xf32>, vector<8x512xf32> -> vector<72x512xf32>
    %cst_37 = arith.constant dense<0.000000e+00> : vector<16x512xf32>
    %159 = tpu.matmul %2, %158, %cst_37 {dimension_numbers = #tpu.dot_dimension_numbers<[1], [0], [0], [1], [0, 0, 1, 1], [], []>} : vector<16x72xf32>, vector<72x512xf32>, vector<16x512xf32> -> vector<16x512xf32>
    %160 = vector.broadcast %8 : vector<16x1xf32> to vector<16x512xf32>
    %161 = arith.addf %159, %160 : vector<16x512xf32>
    %cst_38 = arith.constant 0.000000e+00 : f32
    %162 = vector.broadcast %cst_38 : f32 to vector<16x512xf32>
    %163 = arith.maximumf %161, %162 : vector<16x512xf32>
    %cst_39 = arith.constant dense<0.000000e+00> : vector<16x512xf32>
    %164 = tpu.matmul %3, %125, %cst_39 {dimension_numbers = #tpu.dot_dimension_numbers<[1], [0], [0], [1], [0, 0, 1, 1], [], []>} : vector<16x8xf32>, vector<8x512xf32>, vector<16x512xf32> -> vector<16x512xf32>
    %165 = vector.broadcast %9 : vector<16x1xf32> to vector<16x512xf32>
    %166 = arith.addf %164, %165 : vector<16x512xf32>
    %c16_i32_40 = arith.constant 16 : i32
    %167 = tpu.dynamic_rotate %163 by %c16_i32_40 dim 1 : vector<16x512xf32>, i32 -> vector<16x512xf32>
    %c496_i32_41 = arith.constant 496 : i32
    %168 = tpu.dynamic_rotate %163 by %c496_i32_41 dim 1 : vector<16x512xf32>, i32 -> vector<16x512xf32>
    %c1_i32_42 = arith.constant 1 : i32
    %169 = tpu.dynamic_rotate %167 by %c1_i32_42 dim 1 : vector<16x512xf32>, i32 -> vector<16x512xf32>
    %170 = vector.extract_strided_slice %12 {offsets = [0, 0], sizes = [1, 512], strides = [1, 1]} : vector<9x512xf32> to vector<1x512xf32>
    %171 = vector.broadcast %170 : vector<1x512xf32> to vector<16x512xf32>
    %172 = arith.mulf %169, %171 : vector<16x512xf32>
    %173 = vector.extract_strided_slice %12 {offsets = [1, 0], sizes = [1, 512], strides = [1, 1]} : vector<9x512xf32> to vector<1x512xf32>
    %174 = vector.broadcast %173 : vector<1x512xf32> to vector<16x512xf32>
    %175 = arith.mulf %167, %174 : vector<16x512xf32>
    %c511_i32_43 = arith.constant 511 : i32
    %176 = tpu.dynamic_rotate %167 by %c511_i32_43 dim 1 : vector<16x512xf32>, i32 -> vector<16x512xf32>
    %177 = vector.extract_strided_slice %12 {offsets = [2, 0], sizes = [1, 512], strides = [1, 1]} : vector<9x512xf32> to vector<1x512xf32>
    %178 = vector.broadcast %177 : vector<1x512xf32> to vector<16x512xf32>
    %179 = arith.mulf %176, %178 : vector<16x512xf32>
    %c1_i32_44 = arith.constant 1 : i32
    %180 = tpu.dynamic_rotate %163 by %c1_i32_44 dim 1 : vector<16x512xf32>, i32 -> vector<16x512xf32>
    %181 = vector.extract_strided_slice %12 {offsets = [3, 0], sizes = [1, 512], strides = [1, 1]} : vector<9x512xf32> to vector<1x512xf32>
    %182 = vector.broadcast %181 : vector<1x512xf32> to vector<16x512xf32>
    %183 = arith.mulf %180, %182 : vector<16x512xf32>
    %c511_i32_45 = arith.constant 511 : i32
    %184 = tpu.dynamic_rotate %163 by %c511_i32_45 dim 1 : vector<16x512xf32>, i32 -> vector<16x512xf32>
    %185 = vector.extract_strided_slice %12 {offsets = [5, 0], sizes = [1, 512], strides = [1, 1]} : vector<9x512xf32> to vector<1x512xf32>
    %186 = vector.broadcast %185 : vector<1x512xf32> to vector<16x512xf32>
    %187 = arith.mulf %184, %186 : vector<16x512xf32>
    %c1_i32_46 = arith.constant 1 : i32
    %188 = tpu.dynamic_rotate %168 by %c1_i32_46 dim 1 : vector<16x512xf32>, i32 -> vector<16x512xf32>
    %189 = vector.extract_strided_slice %12 {offsets = [6, 0], sizes = [1, 512], strides = [1, 1]} : vector<9x512xf32> to vector<1x512xf32>
    %190 = vector.broadcast %189 : vector<1x512xf32> to vector<16x512xf32>
    %191 = arith.mulf %188, %190 : vector<16x512xf32>
    %192 = vector.extract_strided_slice %12 {offsets = [7, 0], sizes = [1, 512], strides = [1, 1]} : vector<9x512xf32> to vector<1x512xf32>
    %193 = vector.broadcast %192 : vector<1x512xf32> to vector<16x512xf32>
    %194 = arith.mulf %168, %193 : vector<16x512xf32>
    %c511_i32_47 = arith.constant 511 : i32
    %195 = tpu.dynamic_rotate %168 by %c511_i32_47 dim 1 : vector<16x512xf32>, i32 -> vector<16x512xf32>
    %196 = vector.extract_strided_slice %12 {offsets = [8, 0], sizes = [1, 512], strides = [1, 1]} : vector<9x512xf32> to vector<1x512xf32>
    %197 = vector.broadcast %196 : vector<1x512xf32> to vector<16x512xf32>
    %198 = arith.mulf %195, %197 : vector<16x512xf32>
    %199 = tpu.concatenate %172, %175, %179, %183, %163, %187, %191, %194, %198 in 0 : vector<16x512xf32>, vector<16x512xf32>, vector<16x512xf32>, vector<16x512xf32>, vector<16x512xf32>, vector<16x512xf32>, vector<16x512xf32>, vector<16x512xf32>, vector<16x512xf32> -> vector<144x512xf32>
    %cst_48 = arith.constant dense<0.000000e+00> : vector<16x512xf32>
    %200 = tpu.matmul %4, %199, %cst_48 {dimension_numbers = #tpu.dot_dimension_numbers<[1], [0], [0], [1], [0, 0, 1, 1], [], []>} : vector<16x144xf32>, vector<144x512xf32>, vector<16x512xf32> -> vector<16x512xf32>
    %201 = vector.broadcast %10 : vector<16x1xf32> to vector<16x512xf32>
    %202 = arith.addf %200, %201 : vector<16x512xf32>
    %203 = arith.addf %202, %166 : vector<16x512xf32>
    %cst_49 = arith.constant 0.000000e+00 : f32
    %204 = vector.broadcast %cst_49 : f32 to vector<16x512xf32>
    %205 = arith.maximumf %203, %204 : vector<16x512xf32>
    %206 = vector.extract_strided_slice %205 {offsets = [0, 0], sizes = [16, 256], strides = [1, 1]} : vector<16x512xf32> to vector<16x256xf32>
    %cst_50 = arith.constant dense<0.000000e+00> : vector<16xf32>
    %207 = vector.multi_reduction <add>, %206, %cst_50 [1] : vector<16x256xf32> to vector<16xf32>
    %208 = vector.shape_cast %207 : vector<16xf32> to vector<16x1xf32>
    %209 = vector.extract_strided_slice %205 {offsets = [0, 256], sizes = [16, 256], strides = [1, 1]} : vector<16x512xf32> to vector<16x256xf32>
    %cst_51 = arith.constant dense<0.000000e+00> : vector<16xf32>
    %210 = vector.multi_reduction <add>, %209, %cst_51 [1] : vector<16x256xf32> to vector<16xf32>
    %211 = vector.shape_cast %210 : vector<16xf32> to vector<16x1xf32>
    %212 = tpu.concatenate %208, %211 in 1 : vector<16x1xf32>, vector<16x1xf32> -> vector<16x2xf32>
    %cst_52 = arith.constant 3.906250e-03 : f32
    %213 = vector.broadcast %cst_52 : f32 to vector<16x2xf32>
    %214 = arith.mulf %212, %213 : vector<16x2xf32>
    %cst_53 = arith.constant dense<0.000000e+00> : vector<10x2xf32>
    %215 = tpu.matmul %5, %214, %cst_53 {dimension_numbers = #tpu.dot_dimension_numbers<[1], [0], [0], [1], [0, 0, 1, 1], [], []>} : vector<10x16xf32>, vector<16x2xf32>, vector<10x2xf32> -> vector<10x2xf32>
    %216 = vector.broadcast %11 : vector<10x1xf32> to vector<10x2xf32>
    %217 = arith.addf %215, %216 : vector<10x2xf32>
    %c0_54 = arith.constant 0 : index
    %c0_55 = arith.constant 0 : index
    %218 = vector.load %arg2[%c0_54, %c0_55] : memref<10x2xf32, #tpu.memory_space<vmem>>, vector<10x2xf32>
    tpu.vector_store %arg2[%c0_54, %c0_55], %217 {strides = array<i32>} : memref<10x2xf32, #tpu.memory_space<vmem>>, vector<10x2xf32>,
    return
  }
}

</mosaic_0001>

<bundles_post_ra>
// kernel: cnn_model_2d_forward.1
= control target key start
LH: loop header
LB: loop body
LE: loop exit
PB: predicated region body
PF: predicated region fallthrough
CT: control target
= control target key end

     0   :  { %v1591_v1 = vmov 1   ;;  %s1592_s11 = smov 16   ;;  %s1593_s12 = smov 112   ;;  %v1594_v4 = vmov 2   ;;  %v1596_v8 = vmov 0   ;;  %v1598_v9 = vmov 3   ;;  %s3160_s0 = inlined_call_operand.vmem [shape: f32[1,512], index: 0, kind: input, shape index: {}]   ;;  %s3161_s1 = inlined_call_operand.vmem [shape: f32[16,1536], index: 1, kind: input, shape index: {}]   ;;  %s3162_s2 = inlined_call_operand.vmem [shape: f32[10,2], index: 2, kind: output, shape index: {}]  }
   0x1   :  { %v34_v0 = vld [vmem:[%s3160_s0] sm:$0xf]  ;;  %1564 = vset.pattern.permute.xlu0 %v1591_v1  ;;  %1565 = vset.pattern.permute.xlu1 %v1594_v4  ;;  %s1595_s0 = smov 1   ;;  %s1597_s15 = smov 127   ;;  %v3163_v10 = vmov 5   ;;  %v3165_v11 = vmov 4   ;;  %v52_v12 = vlaneseq }
   0x2   :  { %v1623_v2 = vperm.slane %v34_v0, 2  ;;  %v1625_v3 = vperm.slane %v34_v0, 0  ;;  %v1634_v5 = vperm.slane %v34_v0, 3  ;;  %v1636_v6 = vperm.slane %v34_v0, 1  ;;  %v1657_v7 = vld [vmem:[%s3161_s1] sm:$0xff]  ;;  %1563 = vset.pattern.permute.xlu2 %v1596_v8  ;;  %v1742_v33 = vld [vmem:[%s3161_s1 + $0x38] sm:$0xff] }
   0x3   :  { %v1677_v15 = vand.u32 127, %v52_v12  ;;  %v1601_v16 = vmov 6   ;;  %v1602_v22 = vmov 8   ;;  %v1603_v28 = vmov 7   ;;  %v1769_v48 = vld [vmem:[%s3161_s1 + $0x40] sm:$0xff]  ;;  %v1774_v49 = vld [vmem:[%s3161_s1 + $0x48] sm:$0xff] }
   0x4   :  { %48 = vrot.lane.b32.xlu1 %v1623_v2, %s1592_s11  ;;  %44 = vrot.lane.b32.xlu0 %v1625_v3, %s1592_s11  ;;  %v1779_v50 = vld [vmem:[%s3161_s1 + $0x50] sm:$0xff]  ;;  %v202_v52 = vrot.slane %v1769_v48, 7  ;;  %v93_v53 = vrot.slane %v1769_v48, 1  ;;  %v1788_v54 = vld [vmem:[%s3161_s1 + $0x58] sm:$0xff]  ;;  %v94_v56 = vrot.slane %v1774_v49, 1  ;;  %vm544_vm4 = vcmask 588800  }
   0x5   :  { %59 = vrot.lane.b32.xlu2 %v1625_v3, %s1593_s12  ;;  %vm54_vm0 = vcmp.lt.s32.totalorder %v1677_v15, 16  ;;  %vm67_vm1 = vcmp.lt.s32.totalorder %v1677_v15, 112  ;;  %v95_v57 = vrot.slane %v1779_v50, 1  ;;  %v96_v59 = vrot.slane %v1788_v54, 1 }
   0x6   :  { %v204_v62 = vrot.slane %v1779_v50, 7  ;;  %vm80_vm2 = vcmp.lt.s32.totalorder %v1677_v15, 1  ;;  %vm113_vm3 = vcmp.lt.s32.totalorder %v1677_v15, 127  ;;  %vm887_vm5 = vcmask 64512  }
   0x7   :  { %vm1250_vm6 = vcmask 130048   ;;  %vm1469_vm7 = vcmask 7168   ;;  %vm1512_vm8 = vcmask 15360   ;;  %vm1514_vm9 = vcmask 9216  }
   0xc   :  { %50 = vrot.lane.b32.xlu1 %v1634_v5, %s1592_s11  ;;  %46 = vrot.lane.b32.xlu0 %v1636_v6, %s1592_s11 }
   0xd   :  { %61 = vrot.lane.b32.xlu2 %v1636_v6, %s1593_s12 }
  0x14   :  { %63 = vrot.lane.b32.xlu0 %v1623_v2, %s1593_s12  ;;  %65 = vrot.lane.b32.xlu1 %v1634_v5, %s1593_s12 }
  0x15   :  { %132 = vrot.lane.b32.xlu2 %v1636_v6, %s1595_s0 }
  0x1c   :  { %134 = vrot.lane.b32.xlu0 %v1623_v2, %s1595_s0  ;;  %130 = vrot.lane.b32.xlu1 %v1625_v3, %s1595_s0 }
  0x1d   :  { %232 = vperm.xlu2 %1563, %v1657_v7  }
  0x24   :  { %244 = vperm.xlu0 %1564, %v1657_v7   ;;  %136 = vrot.lane.b32.xlu1 %v1634_v5, %s1595_s0 }
  0x25   :  { %154 = vrot.lane.b32.xlu2 %v1625_v3, %s1597_s15 }
  0x26   :  { %1570 = vset.pattern.permute.xlu2 %v1603_v28 }
  0x2c   :  { %260 = vperm.xlu1 %1565, %v1657_v7   ;;  %160 = vrot.lane.b32.xlu0 %v1634_v5, %s1597_s15 }
  0x2d   :  { %158 = vrot.lane.b32.xlu2 %v1623_v2, %s1597_s15  ;;  %1567 = vset.pattern.permute.xlu0 %v3165_v11 }
  0x34   :  { %156 = vrot.lane.b32.xlu1 %v1636_v6, %s1597_s15  ;;  %292 = vperm.xlu0 %1567, %v1657_v7  }
  0x35   :  { %1566 = vset.pattern.permute.xlu1 %v1598_v9 }
  0x3c   :  { %276 = vperm.xlu1 %1566, %v1657_v7   ;;  %1571 = vset.pattern.permute.xlu0 %v1602_v22 }
  0x44   :  { %1568 = vset.pattern.permute.xlu1 %v3163_v10 }
  0x45   :  { %304 = vperm.xlu1 %1568, %v1657_v7  }
  0x4d   :  { %1569 = vset.pattern.permute.xlu1 %v1601_v16  ;;  %v145_v16 = vrot.slane %v1788_v54, 3 }
  0x5f   :  { %v60_v24 = vpop.permute.xlu2 %59 }
  0x67   :  { %v62_v29 = vpop.permute.xlu2 %61 }
  0x68   :  { %v70_v30 = vsel %vm67_vm1, %v60_v24, %v62_v29 }
  0x69   :  { %v1797_v60 = vmul.f32 %v202_v52, %v70_v30 }
  0x6f   :  { %v133_v34 = vpop.permute.xlu2 %132 }
  0x76   :  { %v49_v13 = vpop.permute.xlu1 %48  ;;  %v45_v14 = vpop.permute.xlu0 %44 }
  0x77   :  { %v1751_v36 = vpop.permute.xlu2 %232 }
  0x7e   :  { %v51_v17 = vpop.permute.xlu1 %50  ;;  %v47_v18 = vpop.permute.xlu0 %46 }
  0x7f   :  { %v1682_v19 = vsel %vm54_vm0, %v51_v17, %v45_v14  ;;  %v1686_v20 = vsel %vm54_vm0, %v45_v14, %v47_v18  ;;  %v1690_v21 = vsel %vm54_vm0, %v47_v18, %v49_v13  ;;  %v1700_v23 = vsel %vm54_vm0, %v49_v13, %v51_v17  ;;  %v1754_v38 = vpop.permute.xlu2 %154 }
  0x80   :  { %72 = vrot.lane.b32.xlu2 %v1682_v19, %s1595_s0  ;;  %74 = vrot.lane.b32.xlu0 %v1686_v20, %s1595_s0  ;;  %v101_v61 = vmul.f32 %v93_v53, %v1682_v19  ;;  %v102_v63 = vmul.f32 %v94_v56, %v1686_v20  ;;  %v103_v0 = vmul.f32 %v95_v57, %v1690_v21  ;;  %v142_v14 = vrot.slane %v1769_v48, 3 }
  0x81   :  { %76 = vrot.lane.b32.xlu1 %v1690_v21, %s1595_s0 }
  0x82   :  { %v247_v12 = vperm.slane %v101_v61, 0 }
  0x86   :  { %v66_v25 = vpop.permute.xlu1 %65  ;;  %v64_v26 = vpop.permute.xlu0 %63 }
  0x87   :  { %v1711_v27 = vsel %vm67_vm1, %v64_v26, %v66_v25  ;;  %v1723_v31 = vsel %vm67_vm1, %v62_v29, %v64_v26  ;;  %v1732_v32 = vsel %vm67_vm1, %v66_v25, %v60_v24  ;;  %v1758_v41 = vpop.permute.xlu2 %158  ;;  %v143_v24 = vrot.slane %v1774_v49, 3 }
  0x88   :  { %78 = vrot.lane.b32.xlu2 %v1700_v23, %s1595_s0  ;;  %105 = vrot.lane.b32.xlu0 %v1682_v19, %s1597_s15  ;;  %v1810_v13 = vmul.f32 %v204_v62, %v1711_v27  ;;  %v248_v19 = vperm.slane %v102_v63, 0  ;;  %v144_v25 = vrot.slane %v1779_v50, 3 }
  0x89   :  { %107 = vrot.lane.b32.xlu1 %v1686_v20, %s1597_s15  ;;  %v249_v20 = vperm.slane %v103_v0, 0  ;;  %v119_v0 = vrot.slane %v1774_v49, 2 }
  0x8a   :  { %v341_v52 = vperm.slane %v1810_v13, 0 }
  0x8e   :  { %v131_v35 = vpop.permute.xlu1 %130  ;;  %v135_v39 = vpop.permute.xlu0 %134 }
  0x90   :  { %111 = vrot.lane.b32.xlu0 %v1700_v23, %s1597_s15  ;;  %109 = vrot.lane.b32.xlu2 %v1690_v21, %s1597_s15 }
  0x91   :  { %182 = vrot.lane.b32.xlu1 %v1711_v27, %s1595_s0 }
  0x96   :  { %v137_v37 = vpop.permute.xlu1 %136  ;;  %v245_v42 = vpop.permute.xlu0 %244 }
  0x97   :  { %v138_v21 = vsel %vm80_vm2, %v135_v39, %v137_v37  ;;  %v141_v22 = vsel %vm80_vm2, %v137_v37, %v131_v35  ;;  %v140_v37 = vsel %vm80_vm2, %v131_v35, %v133_v34  ;;  %v1843_v62 = vmul.f32 %v249_v20, %v245_v42 }
  0x98   :  { %178 = vrot.lane.b32.xlu2 %v70_v30, %s1595_s0  ;;  %180 = vrot.lane.b32.xlu0 %v1723_v31, %s1595_s0  ;;  %v1837_v56 = vmul.f32 %v142_v14, %v141_v22  ;;  %v1839_v57 = vmul.f32 %v145_v16, %v138_v21 }
  0x99   :  { %216 = vrot.lane.b32.xlu1 %v1723_v31, %s1597_s15 }
  0x9e   :  { %v1756_v40 = vpop.permute.xlu1 %260  ;;  %v1762_v45 = vpop.permute.xlu0 %160 }
  0xa0   :  { %184 = vrot.lane.b32.xlu2 %v1732_v32, %s1595_s0  ;;  %220 = vrot.lane.b32.xlu0 %v1732_v32, %s1597_s15 }
  0xa1   :  { %320 = vperm.xlu1 %1569, %v1657_v7  }
  0xa6   :  { %v1760_v43 = vpop.permute.xlu1 %156  ;;  %v1781_v51 = vpop.permute.xlu0 %292 }
  0xa8   :  { %214 = vrot.lane.b32.xlu2 %v70_v30, %s1597_s15  ;;  %352 = vperm.xlu0 %1571, %v1657_v7   ;;  %v139_v30 = vsel %vm80_vm2, %v133_v34, %v135_v39  ;;  %v151_v34 = vmul.f32 %v143_v24, %v140_v37 }
  0xa9   :  { %1572 = vset.pattern.permute.xlu1 %v1596_v8  ;;  %v203_v8 = vrot.slane %v1774_v49, 7  ;;  %v152_v35 = vmul.f32 %v144_v25, %v139_v30 }
  0xaa   :  { %369 = vperm.xlu1 %1572, %v1742_v33  }
  0xab   :  { %v1827_v29 = vmul.f32 %v203_v8, %v1723_v31  ;;  %v279_v8 = vperm.slane %v1837_v56, 0  ;;  %v162_v56 = vsel %vm113_vm3, %v1758_v41, %v1762_v45 }
  0xae   :  { %v1764_v47 = vpop.permute.xlu1 %276 }
  0xb0   :  { %218 = vrot.lane.b32.xlu2 %v1711_v27, %s1597_s15  ;;  %1575 = vset.pattern.permute.xlu0 %v1594_v4 }
  0xb2   :  { %1577 = vset.pattern.permute.xlu1 %v1598_v9  ;;  %v205_v9 = vrot.slane %v1788_v54, 7 }
  0xb4   :  { %v1835_v53 = vmul.f32 %v205_v9, %v1732_v32  ;;  %v282_v9 = vperm.slane %v1839_v57, 0  ;;  %v163_v57 = vsel %vm113_vm3, %v1760_v43, %v1758_v41 }
  0xb7   :  { %v1794_v58 = vpop.permute.xlu1 %304 }
  0xb8   :  { %336 = vperm.xlu2 %1570, %v1657_v7   ;;  %v339_v7 = vperm.slane %v1797_v60, 0 }
  0xc0   :  { %1573 = vset.pattern.permute.xlu2 %v1591_v1  ;;  %v104_v1 = vmul.f32 %v96_v59, %v1700_v23  ;;  %v252_v59 = vmul.f32 %v248_v19, %v245_v42 }
  0xc2   :  { %v250_v28 = vperm.slane %v104_v1, 0  ;;  %v118_v1 = vrot.slane %v1769_v48, 2 }
  0xc4   :  { %v1845_v39 = vmul.f32 %v250_v28, %v245_v42 }
  0xda   :  { %v73_v44 = vpop.permute.xlu2 %72 }
  0xe2   :  { %v79_v46 = vpop.permute.xlu2 %78 }
  0xe3   :  { %v84_v26 = vsel %vm80_vm2, %v79_v46, %v73_v44 }
  0xe4   :  { %v85_v31 = vmul.f32 %v84_v26, %v1769_v48  ;;  %v167_v26 = vrot.slane %v1774_v49, 5 }
  0xe6   :  { %v235_v19 = vperm.slane %v85_v31, 0 }
  0xe8   :  { %v239_v31 = vmul.f32 %v235_v19, %v1751_v36  ;;  %v175_v19 = vmul.f32 %v167_v26, %v163_v57 }
  0xea   :  { %v1790_v55 = vpop.permute.xlu2 %109 }
  0xf2   :  { %v1814_v17 = vpop.permute.xlu2 %178  ;;  %v75_v18 = vpop.permute.xlu0 %74 }
  0xf3   :  { %v77_v23 = vpop.permute.xlu1 %76  ;;  %v83_v27 = vsel %vm80_vm2, %v73_v44, %v75_v18  ;;  %v251_v44 = vmul.f32 %v247_v12, %v245_v42  ;;  %v166_v12 = vrot.slane %v1769_v48, 5  ;;  %v169_v42 = vrot.slane %v1788_v54, 5 }
  0xf4   :  { %v86_v61 = vmul.f32 %v83_v27, %v1774_v49  ;;  %v81_v32 = vsel %vm80_vm2, %v77_v23, %v79_v46  ;;  %v82_v63 = vsel %vm80_vm2, %v75_v18, %v77_v23  ;;  %v164_v46 = vsel %vm113_vm3, %v1754_v38, %v1760_v43 }
  0xf5   :  { %v165_v18 = vsel %vm113_vm3, %v1762_v45, %v1754_v38  ;;  %v88_v22 = vmul.f32 %v81_v32, %v1788_v54  ;;  %v87_v23 = vmul.f32 %v82_v63, %v1779_v50  ;;  %v168_v27 = vrot.slane %v1779_v50, 5 }
  0xf6   :  { %v236_v20 = vperm.slane %v86_v61, 0  ;;  %v1876_v30 = vmul.f32 %v166_v12, %v164_v46  ;;  %v1878_v37 = vmul.f32 %v169_v42, %v165_v18  ;;  %v120_v12 = vrot.slane %v1779_v50, 2 }
  0xf7   :  { %v121_v42 = vrot.slane %v1788_v54, 2  ;;  %v280_v46 = vperm.slane %v151_v34, 0  ;;  %v281_v18 = vperm.slane %v152_v35, 0 }
  0xf8   :  { %v240_v61 = vmul.f32 %v236_v20, %v1751_v36  ;;  %v307_v41 = vperm.slane %v1876_v30, 0  ;;  %v310_v43 = vperm.slane %v1878_v37, 0  ;;  %v1896_v20 = vmul.f32 %v168_v27, %v162_v56 }
  0xf9   :  { %v283_v56 = vmul.f32 %v279_v8, %v1764_v47  ;;  %v284_v57 = vmul.f32 %v280_v46, %v1764_v47 }
  0xfa   :  { %v1857_v14 = vpop.permute.xlu2 %184  ;;  %v106_v16 = vpop.permute.xlu0 %105 }
  0xfb   :  { %v108_v21 = vpop.permute.xlu1 %107 }
  0xfc   :  { %v115_v24 = vsel %vm113_vm3, %v108_v21, %v1790_v55  ;;  %v116_v25 = vsel %vm113_vm3, %v106_v16, %v108_v21 }
  0xfd   :  { %v127_v28 = vmul.f32 %v119_v0, %v115_v24  ;;  %v126_v38 = vmul.f32 %v118_v1, %v116_v25  ;;  %v238_v0 = vperm.slane %v88_v22, 0  ;;  %v237_v1 = vperm.slane %v87_v23, 0 }
  0xfe   :  { %v255_v23 = vadd.f32 %v251_v44, %v239_v31  ;;  %v256_v25 = vadd.f32 %v252_v59, %v240_v61  ;;  %v285_v31 = vmul.f32 %v281_v18, %v1764_v47  ;;  %v286_v61 = vmul.f32 %v282_v9, %v1764_v47 }
  0xff   :  { %v264_v32 = vperm.slane %v127_v28, 0  ;;  %v263_v63 = vperm.slane %v126_v38, 0  ;;  %v242_v38 = vmul.f32 %v238_v0, %v1751_v36  ;;  %v241_v30 = vmul.f32 %v237_v1, %v1751_v36 }
 0x100   :  { %v190_v0 = vrot.slane %v1769_v48, 6  ;;  %v193_v36 = vrot.slane %v1788_v54, 6  ;;  %v191_v47 = vrot.slane %v1774_v49, 6  ;;  %v192_v9 = vrot.slane %v1779_v50, 6 }
 0x101   :  { %v268_v45 = vmul.f32 %v264_v32, %v1756_v40  ;;  %v267_v21 = vmul.f32 %v263_v63, %v1756_v40  ;;  %v308_v63 = vperm.slane %v175_v19, 0  ;;  %v258_v1 = vadd.f32 %v1845_v39, %v242_v38 }
 0x102   :  { %v1898_v24 = vpop.permute.xlu2 %214  ;;  %v112_v22 = vpop.permute.xlu0 %111  ;;  %v257_v8 = vadd.f32 %v1843_v62, %v241_v30 }
 0x103   :  { %v183_v28 = vpop.permute.xlu1 %182  ;;  %v114_v34 = vsel %vm113_vm3, %v1790_v55, %v112_v22  ;;  %v117_v35 = vsel %vm113_vm3, %v112_v22, %v106_v16  ;;  %v272_v44 = vadd.f32 %v268_v45, %v256_v25  ;;  %v271_v59 = vadd.f32 %v267_v21, %v255_v23 }
 0x104   :  { %v128_v26 = vmul.f32 %v120_v12, %v114_v34  ;;  %v129_v27 = vmul.f32 %v121_v42, %v117_v35  ;;  %v309_v16 = vperm.slane %v1896_v20, 0  ;;  %v189_v45 = vsel %vm80_vm2, %v1857_v14, %v1814_v17 }
 0x105   :  { %v288_v46 = vadd.f32 %v284_v57, %v272_v44  ;;  %v287_v18 = vadd.f32 %v283_v56, %v271_v59  ;;  %v186_v39 = vsel %vm80_vm2, %v183_v28, %v1857_v14  ;;  %v296_v22 = vmul.f32 %v1781_v51, %v1636_v6 }
 0x106   :  { %v265_v55 = vperm.slane %v128_v26, 0  ;;  %v266_v32 = vperm.slane %v129_v27, 0  ;;  %v297_v14 = vmul.f32 %v1781_v51, %v1623_v2  ;;  %v298_v35 = vmul.f32 %v1781_v51, %v1634_v5 }
 0x107   :  { %v198_v26 = vmul.f32 %v190_v0, %v189_v45  ;;  %v201_v27 = vmul.f32 %v193_v36, %v186_v39  ;;  %v300_v57 = vadd.f32 %v296_v22, %v288_v46  ;;  %v311_v44 = vmul.f32 %v307_v41, %v1794_v58  ;;  %v32_v22 = vld [vmem:[%s3161_s1 + $0xb0] sm:$0x1] }
 0x108   :  { %v269_v12 = vmul.f32 %v265_v55, %v1756_v40  ;;  %v270_v42 = vmul.f32 %v266_v32, %v1756_v40  ;;  %v295_v40 = vmul.f32 %v1781_v51, %v1625_v3  ;;  %v31_v51 = vld [vmem:[%s3161_s1 + $0xa8] sm:$0x1]  ;;  %v313_v0 = vmul.f32 %v309_v16, %v1794_v58 }
 0x109   :  { %v314_v36 = vmul.f32 %v310_v43, %v1794_v58 }
 0x10a   :  { %v273_v62 = vadd.f32 %v269_v12, %v257_v8  ;;  %v274_v21 = vadd.f32 %v270_v42, %v258_v1  ;;  %v219_v19 = vpop.permute.xlu2 %218  ;;  %v181_v20 = vpop.permute.xlu0 %180  ;;  %v299_v56 = vadd.f32 %v295_v40, %v287_v18  ;;  %v30_v1 = vld [vmem:[%s3161_s1 + $0xa0] sm:$0x1]  ;;  %v323_v8 = vperm.slane %v198_v26, 0 }
 0x10b   :  { %v217_v23 = vpop.permute.xlu1 %216  ;;  %v187_v25 = vsel %vm80_vm2, %v181_v20, %v183_v28  ;;  %v188_v34 = vsel %vm80_vm2, %v1814_v17, %v181_v20  ;;  %v312_v28 = vmul.f32 %v308_v63, %v1794_v58  ;;  %v342_v63 = vperm.slane %v1835_v53, 0 }
 0x10c   :  { %v289_v38 = vadd.f32 %v285_v31, %v273_v62  ;;  %v290_v30 = vadd.f32 %v286_v61, %v274_v21  ;;  %v199_v59 = vmul.f32 %v191_v47, %v188_v34  ;;  %v200_v55 = vmul.f32 %v192_v9, %v187_v25 }
 0x10d   :  { %v223_v31 = vsel %vm113_vm3, %v217_v23, %v219_v19  ;;  %v224_v41 = vsel %vm113_vm3, %v1898_v24, %v217_v23  ;;  %v340_v61 = vperm.slane %v1827_v29, 0  ;;  %v326_v12 = vperm.slane %v201_v27, 0  ;;  %v33_v23 = vld [vmem:[%s3161_s1 + $0xb8] sm:$0x1] }
 0x10e   :  { %v301_v32 = vadd.f32 %v297_v14, %v289_v38  ;;  %v302_v17 = vadd.f32 %v298_v35, %v290_v30  ;;  %v315_v42 = vadd.f32 %v311_v44, %v299_v56  ;;  %v316_v46 = vadd.f32 %v312_v28, %v300_v57 }
 0x10f   :  { %v226_v18 = vmul.f32 %v224_v41, %v30_v1  ;;  %v227_v47 = vmul.f32 %v223_v31, %v31_v51  ;;  %v324_v9 = vperm.slane %v199_v59, 0  ;;  %v325_v45 = vperm.slane %v200_v55, 0 }
 0x110   :  { %v317_v16 = vadd.f32 %v313_v0, %v301_v32  ;;  %v318_v20 = vadd.f32 %v314_v36, %v302_v17 }
 0x111   :  { %v355_v13 = vperm.slane %v226_v18, 0 }
 0x112   :  { %v337_v39 = vpop.permute.xlu2 %336  ;;  %v221_v62 = vpop.permute.xlu0 %220 }
 0x113   :  { %v343_v29 = vmul.f32 %v339_v7, %v337_v39  ;;  %v344_v53 = vmul.f32 %v340_v61, %v337_v39  ;;  %v321_v21 = vpop.permute.xlu1 %320  ;;  %v345_v60 = vmul.f32 %v341_v52, %v337_v39  ;;  %v346_v7 = vmul.f32 %v342_v63, %v337_v39 }
 0x114   :  { %v327_v40 = vmul.f32 %v323_v8, %v321_v21  ;;  %v328_v37 = vmul.f32 %v324_v9, %v321_v21  ;;  %v329_v58 = vmul.f32 %v325_v45, %v321_v21  ;;  %v330_v43 = vmul.f32 %v326_v12, %v321_v21 }
 0x115   :  { %v222_v25 = vsel %vm113_vm3, %v219_v19, %v221_v62  ;;  %v225_v34 = vsel %vm113_vm3, %v221_v62, %v1898_v24  ;;  %v356_v52 = vperm.slane %v227_v47, 0 }
 0x116   :  { %v331_v14 = vadd.f32 %v327_v40, %v315_v42  ;;  %v332_v35 = vadd.f32 %v328_v37, %v316_v46  ;;  %v333_v38 = vadd.f32 %v329_v58, %v317_v16  ;;  %v334_v30 = vadd.f32 %v330_v43, %v318_v20 }
 0x117   :  { %v228_v26 = vmul.f32 %v222_v25, %v32_v22  ;;  %v229_v27 = vmul.f32 %v225_v34, %v33_v23 }
 0x118   :  { %v347_v56 = vadd.f32 %v343_v29, %v331_v14  ;;  %v348_v57 = vadd.f32 %v344_v53, %v332_v35  ;;  %v349_v44 = vadd.f32 %v345_v60, %v333_v38  ;;  %v350_v28 = vadd.f32 %v346_v7, %v334_v30 }
 0x119   :  { %v358_v59 = vperm.slane %v229_v27, 0  ;;  %v357_v32 = vperm.slane %v228_v26, 0  ;;  %v2083_v26 = vld [vmem:[%s3161_s1 + $0xa0] ss:$0 sm:$0xff] }
 0x11a   :  { %v353_v55 = vpop.permute.xlu0 %352 }
 0x11b   :  { %v359_v19 = vmul.f32 %v355_v13, %v353_v55  ;;  %v360_v17 = vmul.f32 %v356_v52, %v353_v55  ;;  %v362_v1 = vmul.f32 %v358_v59, %v353_v55  ;;  %v361_v24 = vmul.f32 %v357_v32, %v353_v55  ;;  %v2099_v13 = vld [vmem:[%s3161_s1 + $0xb8] ss:$0 sm:$0xff]  ;;  %v2104_v52 = vld [vmem:[%s3161_s1 + $0xa8] ss:$0 sm:$0xff]  ;;  %v2109_v59 = vld [vmem:[%s3161_s1 + $0xb0] ss:$0 sm:$0xff] }
 0x11c   :  { %v370_v51 = vpop.permute.xlu1 %369 }
 0x11d   :  { %v363_v31 = vadd.f32 %v359_v19, %v347_v56  ;;  %v364_v41 = vadd.f32 %v360_v17, %v348_v57  ;;  %v366_v61 = vadd.f32 %v362_v1, %v350_v28  ;;  %v365_v8 = vadd.f32 %v361_v24, %v349_v44 }
 0x11e   :  { %v2114_v19 = vperm.slane %v1788_v54, 7  ;;  %v2122_v24 = vperm.slane %v1779_v50, 7 }
 0x11f   :  { %v372_v63 = vadd.f32 %v370_v51, %v363_v31  ;;  %v373_v0 = vadd.f32 %v370_v51, %v364_v41  ;;  %v375_v36 = vadd.f32 %v370_v51, %v366_v61  ;;  %v374_v18 = vadd.f32 %v370_v51, %v365_v8 }
 0x120   :  { %3206 = vst [vmem:[#allocation2_spill] sm:$0xff] %v2114_v19  ;;  %v2119_v51 = vperm.slane %v1774_v49, 7 }
 0x121   :  { %v1974_v12 = vmax.f32 %v372_v63, 0.0  ;;  %v1976_v42 = vmax.f32 %v373_v0, 0.0  ;;  %v1978_v46 = vmax.f32 %v375_v36, 0.0  ;;  %v1986_v47 = vmax.f32 %v374_v18, 0.0 }
 0x123   :  { %398 = vrot.lane.b32.xlu0 %v1978_v46, %s1593_s12  ;;  %394 = vrot.lane.b32.xlu1 %v1976_v42, %s1593_s12 }
 0x124   :  { %392 = vrot.lane.b32.xlu2 %v1974_v12, %s1593_s12 }
 0x12b   :  { %384 = vrot.lane.b32.xlu0 %v1986_v47, %s1592_s11  ;;  %380 = vrot.lane.b32.xlu1 %v1974_v12, %s1592_s11 }
 0x12c   :  { %396 = vrot.lane.b32.xlu2 %v1986_v47, %s1593_s12 }
 0x133   :  { %476 = vrot.lane.b32.xlu0 %v1986_v47, %s1597_s15  ;;  %386 = vrot.lane.b32.xlu1 %v1978_v46, %s1592_s11 }
 0x134   :  { %382 = vrot.lane.b32.xlu2 %v1976_v42, %s1592_s11 }
 0x13b   :  { %454 = vrot.lane.b32.xlu0 %v1976_v42, %s1595_s0  ;;  %478 = vrot.lane.b32.xlu1 %v1978_v46, %s1597_s15 }
 0x13c   :  { %472 = vrot.lane.b32.xlu2 %v1974_v12, %s1597_s15 }
 0x143   :  { %456 = vrot.lane.b32.xlu1 %v1986_v47, %s1595_s0 }
 0x144   :  { %458 = vrot.lane.b32.xlu2 %v1978_v46, %s1595_s0 }
 0x14b   :  { %474 = vrot.lane.b32.xlu1 %v1976_v42, %s1597_s15 }
 0x17e   :  { %v393_v9 = vpop.permute.xlu2 %392 }
 0x186   :  { %v397_v45 = vpop.permute.xlu2 %396 }
 0x18e   :  { %v383_v43 = vpop.permute.xlu2 %382 }
 0x195   :  { %v399_v39 = vpop.permute.xlu0 %398  ;;  %v395_v62 = vpop.permute.xlu1 %394 }
 0x196   :  { %v2014_v29 = vsel %vm67_vm1, %v399_v39, %v393_v9  ;;  %v402_v53 = vsel %vm67_vm1, %v393_v9, %v395_v62  ;;  %v2020_v21 = vsel %vm67_vm1, %v397_v45, %v399_v39  ;;  %v401_v20 = vsel %vm67_vm1, %v395_v62, %v397_v45  ;;  %v2072_v7 = vpop.permute.xlu2 %472 }
 0x197   :  { %526 = vrot.lane.b32.xlu1 %v2014_v29, %s1597_s15  ;;  %520 = vrot.lane.b32.xlu2 %v402_v53, %s1597_s15  ;;  %v519_v36 = vmul.f32 %v2114_v19, %v2014_v29  ;;  %v517_v8 = vmul.f32 %v2119_v51, %v401_v20  ;;  %v518_v18 = vmul.f32 %v2122_v24, %v2020_v21  ;;  %v2137_v9 = vperm.slane %v1779_v50, 6 }
 0x198   :  { %524 = vrot.lane.b32.xlu0 %v2020_v21, %s1597_s15  ;;  %v2140_v45 = vperm.slane %v1788_v54, 6 }
 0x19a   :  { %3207 = vst [vmem:[#allocation3_spill] sm:$0xff] %v2140_v45 }
 0x19d   :  { %v381_v16 = vpop.permute.xlu1 %380  ;;  %v385_v58 = vpop.permute.xlu0 %384 }
 0x19e   :  { %v2048_v23 = vsel %vm54_vm0, %v383_v43, %v385_v58  ;;  %v2058_v60 = vsel %vm54_vm0, %v381_v16, %v383_v43  ;;  %v2074_v25 = vpop.permute.xlu2 %458 }
 0x19f   :  { %498 = vrot.lane.b32.xlu1 %v2014_v29, %s1595_s0  ;;  %494 = vrot.lane.b32.xlu2 %v401_v20, %s1595_s0  ;;  %v2145_v29 = vperm.slane %v1779_v50, 5 }
 0x1a0   :  { %496 = vrot.lane.b32.xlu0 %v2020_v21, %s1595_s0 }
 0x1a5   :  { %v387_v40 = vpop.permute.xlu1 %386  ;;  %v2076_v38 = vpop.permute.xlu0 %476 }
 0x1a6   :  { %v2036_v37 = vsel %vm54_vm0, %v387_v40, %v381_v16  ;;  %v2044_v22 = vsel %vm54_vm0, %v385_v58, %v387_v40  ;;  %v2148_v16 = vperm.slane %v1788_v54, 5 }
 0x1a7   :  { %432 = vrot.lane.b32.xlu1 %v2036_v37, %s1597_s15  ;;  %522 = vrot.lane.b32.xlu2 %v401_v20, %s1597_s15 }
 0x1a8   :  { %492 = vrot.lane.b32.xlu0 %v402_v53, %s1595_s0  ;;  %3208 = vst [vmem:[#allocation4_spill] sm:$0xff] %v2148_v16 }
 0x1ad   :  { %v479_v34 = vpop.permute.xlu1 %478  ;;  %v2090_v56 = vpop.permute.xlu0 %454 }
 0x1ae   :  { %v480_v21 = vsel %vm113_vm3, %v2076_v38, %v479_v34  ;;  %v483_v20 = vsel %vm113_vm3, %v479_v34, %v2072_v7  ;;  %v2169_v34 = vperm.slane %v1788_v54, 3 }
 0x1af   :  { %410 = vrot.lane.b32.xlu1 %v2044_v22, %s1595_s0  ;;  %436 = vrot.lane.b32.xlu2 %v2048_v23, %s1597_s15 }
 0x1b0   :  { %438 = vrot.lane.b32.xlu0 %v2044_v22, %s1597_s15  ;;  %3210 = vst [vmem:[#allocation6_spill] sm:$0xff] %v2169_v34 }
 0x1b5   :  { %v457_v35 = vpop.permute.xlu1 %456 }
 0x1b7   :  { %404 = vrot.lane.b32.xlu1 %v2036_v37, %s1595_s0  ;;  %406 = vrot.lane.b32.xlu2 %v2058_v60, %s1595_s0 }
 0x1b8   :  { %408 = vrot.lane.b32.xlu0 %v2048_v23, %s1595_s0 }
 0x1bd   :  { %v2085_v27 = vpop.permute.xlu1 %474 }
 0x1bf   :  { %452 = vrot.lane.b32.xlu2 %v1974_v12, %s1595_s0 }
 0x1c0   :  { %434 = vrot.lane.b32.xlu0 %v2058_v60, %s1597_s15 }
 0x1c7   :  { %541 = vperm.xlu2 %1573, %v1742_v33  }
 0x1cf   :  { %1574 = vset.pattern.permute.xlu2 %v1594_v4  ;;  %v2088_v4 = vperm.slane %v1769_v48, 7 }
 0x1d1   :  { %v516_v28 = vmul.f32 %v2088_v4, %v402_v53 }
 0x1f1   :  { %v521_v14 = vpop.permute.xlu2 %520 }
 0x1f9   :  { %v2078_v30 = vpop.permute.xlu2 %494 }
 0x201   :  { %v523_v33 = vpop.permute.xlu2 %522 }
 0x202   :  { %v530_v57 = vsel %vm113_vm3, %v521_v14, %v523_v33 }
 0x203   :  { %v536_v44 = vmul.f32 %v2083_v26, %v530_v57  ;;  %v491_v57 = vmul.f32 %v2148_v16, %v483_v20 }
 0x205   :  { %555 = vmatpush.msra.mxu0 %v536_v44  ;;  %v2166_v44 = vperm.slane %v1779_v50, 3 }
 0x207   :  { %556 = vmatpush.msra.mxu0 %v516_v28  ;;  %3209 = vst [vmem:[#allocation5_spill] sm:$0xff] %v2166_v44  ;;  %v460_v28 = vsel %vm80_vm2, %v457_v35, %v2074_v25 }
 0x209   :  { %v527_v55 = vpop.permute.xlu1 %526  ;;  %v2111_v32 = vpop.permute.xlu2 %436 }
 0x20a   :  { %v525_v17 = vpop.permute.xlu0 %524  ;;  %v531_v1 = vsel %vm113_vm3, %v527_v55, %v521_v14 }
 0x20b   :  { %v529_v31 = vsel %vm113_vm3, %v523_v33, %v525_v17  ;;  %v528_v41 = vsel %vm113_vm3, %v525_v17, %v527_v55  ;;  %v539_v61 = vmul.f32 %v2099_v13, %v531_v1  ;;  %v490_v33 = vmul.f32 %v2145_v29, %v480_v21 }
 0x20c   :  { %v537_v63 = vmul.f32 %v2104_v52, %v529_v31  ;;  %v538_v0 = vmul.f32 %v2109_v59, %v528_v41  ;;  %v461_v55 = vsel %vm80_vm2, %v2090_v56, %v457_v35  ;;  %v2178_v17 = vperm.slane %v1769_v48, 6 }
 0x20d   :  { %615 = vmatpush.msra.mxu3 %v539_v61  ;;  %v2181_v1 = vperm.slane %v1774_v49, 6  ;;  %v470_v41 = vmul.f32 %v2166_v44, %v461_v55  ;;  %v471_v61 = vmul.f32 %v2169_v34, %v460_v28  ;;  %v2191_v35 = vperm.slane %v1774_v49, 5 }
 0x20e   :  { %575 = vmatpush.msra.mxu1 %v537_v63  ;;  %595 = vmatpush.msra.mxu2 %v538_v0  ;;  %v2188_v63 = vperm.slane %v1769_v48, 5  ;;  %v481_v0 = vsel %vm113_vm3, %v2085_v27, %v2076_v38 }
 0x20f   :  { %616 = vmatpush.msra.mxu3 %v519_v36 }
 0x210   :  { %576 = vmatpush.msra.mxu1 %v517_v8  ;;  %596 = vmatpush.msra.mxu2 %v518_v18 }
 0x211   :  { %v499_v39 = vpop.permute.xlu1 %498  ;;  %v2142_v53 = vpop.permute.xlu2 %406 }
 0x212   :  { %v497_v62 = vpop.permute.xlu0 %496 }
 0x213   :  { %v500_v40 = vsel %vm80_vm2, %v497_v62, %v499_v39  ;;  %v501_v58 = vsel %vm80_vm2, %v2078_v30, %v497_v62 }
 0x214   :  { %v510_v43 = vmul.f32 %v2137_v9, %v501_v58  ;;  %v511_v14 = vmul.f32 %v2140_v45, %v500_v40  ;;  %v2223_v40 = vperm.slane %v1779_v50, 2  ;;  %v2226_v58 = vperm.slane %v1788_v54, 2 }
 0x216   :  { %597 = vmatpush.msra.mxu2 %v510_v43  ;;  %617 = vmatpush.msra.mxu3 %v511_v14  ;;  %3211 = vst [vmem:[#allocation7_spill] sm:$0xff] %v2223_v40 }
 0x217   :  { %3212 = vst [vmem:[#allocation8_spill] sm:$0xff] %v2226_v58 }
 0x218   :  { %598 = vmatpush.msra.mxu2 %v490_v33  ;;  %618 = vmatpush.msra.mxu3 %v491_v57  ;;  %v2233_v33 = vperm.slane %v1779_v50, 1 }
 0x219   :  { %v453_v8 = vpop.permute.xlu2 %452  ;;  %v433_v38 = vpop.permute.xlu1 %432 }
 0x21a   :  { %v493_v31 = vpop.permute.xlu0 %492  ;;  %599 = vmatpush.msra.mxu2 %v1986_v47  ;;  %619 = vmatpush.msra.mxu3 %v1978_v46  ;;  %v482_v46 = vsel %vm113_vm3, %v2072_v7, %v2085_v27  ;;  %v489_v7 = vmul.f32 %v2191_v35, %v481_v0  ;;  %v2211_v27 = vperm.slane %v1769_v48, 3  ;;  %v463_v20 = vsel %vm80_vm2, %v2074_v25, %v453_v8 }
 0x21b   :  { %v502_v47 = vsel %vm80_vm2, %v493_v31, %v2078_v30  ;;  %v503_v36 = vsel %vm80_vm2, %v499_v39, %v493_v31  ;;  %v488_v21 = vmul.f32 %v2188_v63, %v482_v46  ;;  %v2214_v30 = vperm.slane %v1774_v49, 3  ;;  %3213 = vst [vmem:[#allocation9_spill] sm:$0xff] %v2233_v33 }
 0x21c   :  { %600 = vmatpush.msra.mxu2 %v470_v41  ;;  %620 = vmatpush.msra.mxu3 %v471_v61  ;;  %v508_v18 = vmul.f32 %v2178_v17, %v503_v36  ;;  %v509_v62 = vmul.f32 %v2181_v1, %v502_v47  ;;  %v462_v39 = vsel %vm80_vm2, %v453_v8, %v2090_v56  ;;  %v2236_v25 = vperm.slane %v1788_v54, 1 }
 0x21d   :  { %v468_v14 = vmul.f32 %v2211_v27, %v463_v20  ;;  %v469_v56 = vmul.f32 %v2214_v30, %v462_v39  ;;  %v430_v55 = vmul.f32 %v2233_v33, %v2048_v23  ;;  %v2250_v61 = vperm.slane %v1779_v50, 0  ;;  %v12_v50 = vld [vmem:[%s3161_s1 + $0x8] sm:$0xff] }
 0x21e   :  { %557 = vmatpush.msra.mxu0 %v508_v18  ;;  %577 = vmatpush.msra.mxu1 %v509_v62  ;;  %3214 = vst [vmem:[#allocation10_spill] sm:$0xff] %v2236_v25  ;;  %v431_v31 = vmul.f32 %v2236_v25, %v2044_v22  ;;  %v2253_v0 = vperm.slane %v1788_v54, 0  ;;  %v2268_v54 = vperm.slane %v1769_v48, 2  ;;  %v2271_v8 = vperm.slane %v1774_v49, 2 }
 0x21f   :  { %3215 = vst [vmem:[#allocation11_spill] sm:$0xff] %v2250_v61 }
 0x220   :  { %558 = vmatpush.msra.mxu0 %v488_v21  ;;  %578 = vmatpush.msra.mxu1 %v489_v7  ;;  %3216 = vst [vmem:[#allocation12_spill] sm:$0xff] %v2253_v0  ;;  %v2274_v21 = vperm.slane %v1769_v48, 1  ;;  %v2277_v7 = vperm.slane %v1774_v49, 1 }
 0x221   :  { %v411_v41 = vpop.permute.xlu1 %410 }
 0x222   :  { %v439_v43 = vpop.permute.xlu0 %438  ;;  %559 = vmatpush.msra.mxu0 %v1974_v12  ;;  %579 = vmatpush.msra.mxu1 %v1976_v42 }
 0x223   :  { %v440_v57 = vsel %vm113_vm3, %v2111_v32, %v439_v43  ;;  %v443_v28 = vsel %vm113_vm3, %v439_v43, %v433_v38 }
 0x224   :  { %560 = vmatpush.msra.mxu0 %v468_v14  ;;  %580 = vmatpush.msra.mxu1 %v469_v56  ;;  %v450_v12 = vmul.f32 %v2223_v40, %v440_v57  ;;  %v451_v42 = vmul.f32 %v2226_v58, %v443_v28  ;;  %v2287_v56 = vperm.slane %v1769_v48, 0  ;;  %v2290_v57 = vperm.slane %v1774_v49, 0 }
 0x226   :  { %601 = vmatpush.msra.mxu2 %v450_v12  ;;  %621 = vmatpush.msra.mxu3 %v451_v42  ;;  %3217 = vst [vmem:[#allocation13_spill] sm:$0xff] %v2287_v56  ;;  %v429_v12 = vmul.f32 %v2277_v7, %v2058_v60 }
 0x227   :  { %3218 = vst [vmem:[#allocation14_spill] sm:$0xff] %v2290_v57 }
 0x228   :  { %602 = vmatpush.msra.mxu2 %v430_v55  ;;  %622 = vmatpush.msra.mxu3 %v431_v31 }
 0x229   :  { %v405_v18 = vpop.permute.xlu1 %404 }
 0x22a   :  { %v409_v46 = vpop.permute.xlu0 %408  ;;  %v414_v28 = vsel %vm80_vm2, %v405_v18, %v2142_v53 }
 0x22b   :  { %v412_v47 = vsel %vm80_vm2, %v409_v46, %v411_v41  ;;  %v413_v23 = vsel %vm80_vm2, %v2142_v53, %v409_v46  ;;  %v421_v49 = vmul.f32 %v2290_v57, %v414_v28  ;;  %v542_v53 = vpop.permute.xlu2 %541 }
 0x22c   :  { %v422_v36 = vmul.f32 %v2250_v61, %v413_v23  ;;  %v423_v22 = vmul.f32 %v2253_v0, %v412_v47 }
 0x22e   :  { %603 = vmatpush.msra.mxu2 %v422_v36  ;;  %623 = vmatpush.msra.mxu3 %v423_v22 }
 0x22f   :  { %1522 = vmatmul.msk.f32.vlgmr.msra.gmra.mxu2 %vm544_vm4, %v12_v50  ;;  %1523 = vmatmul.msk.f32.vlgmr.msra.gmra.mxu3 %vm544_vm4, %v12_v50 }
 0x232   :  { %v435_v62 = vpop.permute.xlu0 %434 }
 0x233   :  { %v441_v39 = vsel %vm113_vm3, %v435_v62, %v2111_v32  ;;  %v442_v20 = vsel %vm113_vm3, %v433_v38, %v435_v62  ;;  %v415_v32 = vsel %vm80_vm2, %v411_v41, %v405_v18  ;;  %v428_v38 = vmul.f32 %v2274_v21, %v2036_v37 }
 0x234   :  { %v448_v43 = vmul.f32 %v2268_v54, %v442_v20  ;;  %v449_v14 = vmul.f32 %v2271_v8, %v441_v39  ;;  %v420_v48 = vmul.f32 %v2287_v56, %v415_v32 }
 0x236   :  { %561 = vmatpush.msra.mxu0 %v448_v43  ;;  %581 = vmatpush.msra.mxu1 %v449_v14 }
 0x238   :  { %562 = vmatpush.msra.mxu0 %v428_v38  ;;  %582 = vmatpush.msra.mxu1 %v429_v12 }
 0x23a   :  { %563 = vmatpush.msra.mxu0 %v420_v48  ;;  %583 = vmatpush.msra.mxu1 %v421_v49 }
 0x23b   :  { %1520 = vmatmul.msk.f32.vlgmr.msra.gmra.mxu0 %vm544_vm4, %v12_v50  ;;  %1521 = vmatmul.msk.f32.vlgmr.msra.gmra.mxu1 %vm544_vm4, %v12_v50 }
 0x2b2   :  { %v625_v41 = vpop.f32.mrf.mxu3  ;;  %v605_v50 = vpop.f32.mrf.mxu2 }
 0x2b3   :  { %v626_v47 = vadd.f32 %v625_v41, %v542_v53 }
 0x2b5   :  { %v631_v22 = vadd.f32 %v626_v47, %v1634_v5 }
 0x2b7   :  { %v2318_v18 = vmax.f32 %v631_v22, 0.0 }
 0x2b8   :  { %v565_v42 = vpop.f32.mrf.mxu0  ;;  %v585_v55 = vpop.f32.mrf.mxu1 }
 0x2b9   :  { %v566_v31 = vadd.f32 %v565_v42, %v542_v53  ;;  %v586_v37 = vadd.f32 %v585_v55, %v542_v53 }
 0x2bb   :  { %v628_v60 = vadd.f32 %v566_v31, %v1625_v3  ;;  %v629_v46 = vadd.f32 %v586_v37, %v1636_v6  ;;  %v606_v3 = vadd.f32 %v605_v50, %v542_v53 }
 0x2bd   :  { %v2307_v23 = vmax.f32 %v628_v60, 0.0  ;;  %v2309_v36 = vmax.f32 %v629_v46, 0.0  ;;  %v630_v6 = vadd.f32 %v606_v3, %v1623_v2  ;;  %v2412_v60 = vld [vmem:[%s3161_s1 + $0x38] sm:$0xff] }
 0x2be   :  { %3220 = vst [vmem:[#allocation16_spill] sm:$0xff] %v2412_v60 }
 0x2bf   :  { %698 = vrot.lane.b32.xlu2 %v2309_v36, %s1595_s0  ;;  %638 = vrot.lane.b32.xlu1 %v2309_v36, %s1592_s11  ;;  %v2327_v62 = vmax.f32 %v630_v6, 0.0 }
 0x2c0   :  { %648 = vrot.lane.b32.xlu0 %v2307_v23, %s1593_s12 }
 0x2c7   :  { %654 = vrot.lane.b32.xlu2 %v2318_v18, %s1593_s12  ;;  %636 = vrot.lane.b32.xlu1 %v2307_v23, %s1592_s11 }
 0x2c8   :  { %650 = vrot.lane.b32.xlu0 %v2309_v36, %s1593_s12 }
 0x2cf   :  { %714 = vrot.lane.b32.xlu2 %v2309_v36, %s1597_s15  ;;  %652 = vrot.lane.b32.xlu1 %v2327_v62, %s1593_s12 }
 0x2d0   :  { %642 = vrot.lane.b32.xlu0 %v2318_v18, %s1592_s11 }
 0x2d7   :  { %640 = vrot.lane.b32.xlu2 %v2327_v62, %s1592_s11  ;;  %712 = vrot.lane.b32.xlu1 %v2307_v23, %s1597_s15 }
 0x2d8   :  { %700 = vrot.lane.b32.xlu0 %v2327_v62, %s1595_s0 }
 0x2df   :  { %718 = vrot.lane.b32.xlu2 %v2318_v18, %s1597_s15  ;;  %716 = vrot.lane.b32.xlu1 %v2327_v62, %s1597_s15 }
 0x2e0   :  { %702 = vrot.lane.b32.xlu0 %v2318_v18, %s1595_s0 }
 0x319   :  { %v2347_v5 = vpop.permute.xlu2 %698 }
 0x321   :  { %v655_v32 = vpop.permute.xlu2 %654 }
 0x329   :  { %v2375_v53 = vpop.permute.xlu2 %714 }
 0x331   :  { %v639_v2 = vpop.permute.xlu1 %638  ;;  %v641_v55 = vpop.permute.xlu2 %640 }
 0x332   :  { %v649_v39 = vpop.permute.xlu0 %648  ;;  %v2387_v37 = vsel %vm54_vm0, %v639_v2, %v641_v55 }
 0x333   :  { %v659_v49 = vsel %vm67_vm1, %v655_v32, %v649_v39 }
 0x334   :  { %v747_v56 = vmul.f32 %v659_v49, %v2114_v19 }
 0x339   :  { %v637_v20 = vpop.permute.xlu1 %636  ;;  %v719_v47 = vpop.permute.xlu2 %718 }
 0x33a   :  { %v651_v43 = vpop.permute.xlu0 %650  ;;  %v2351_v14 = vsel %vm54_vm0, %v637_v20, %v639_v2 }
 0x33b   :  { %3219 = vst [vmem:[#allocation15_spill] sm:$0xff] %v2351_v14  ;;  %662 = vrot.lane.b32.xlu1 %v2351_v14, %s1595_s0  ;;  %v2357_v28 = vsel %vm67_vm1, %v649_v39, %v651_v43 }
 0x33c   :  { %728 = vrot.lane.b32.xlu2 %v2357_v28, %s1595_s0  ;;  %748 = vrot.lane.b32.xlu0 %v2357_v28, %s1597_s15 }
 0x341   :  { %v653_v38 = vpop.permute.xlu1 %652 }
 0x342   :  { %v656_v12 = vsel %vm67_vm1, %v653_v38, %v655_v32  ;;  %v2367_v48 = vsel %vm67_vm1, %v651_v43, %v653_v38  ;;  %v643_v42 = vpop.permute.xlu0 %642 }
 0x343   :  { %730 = vrot.lane.b32.xlu1 %v2367_v48, %s1595_s0  ;;  %v2383_v31 = vsel %vm54_vm0, %v641_v55, %v643_v42  ;;  %v2397_v41 = vsel %vm54_vm0, %v643_v42, %v637_v20  ;;  %v746_v0 = vmul.f32 %v656_v12, %v2122_v24 }
 0x344   :  { %752 = vrot.lane.b32.xlu2 %v656_v12, %s1597_s15  ;;  %754 = vrot.lane.b32.xlu0 %v659_v49, %s1597_s15 }
 0x349   :  { %v713_v46 = vpop.permute.xlu1 %712 }
 0x34a   :  { %v701_v22 = vpop.permute.xlu0 %700 }
 0x34b   :  { %734 = vrot.lane.b32.xlu1 %v659_v49, %s1595_s0  ;;  %v705_v49 = vsel %vm80_vm2, %v2347_v5, %v701_v22 }
 0x34c   :  { %732 = vrot.lane.b32.xlu2 %v656_v12, %s1595_s0  ;;  %750 = vrot.lane.b32.xlu0 %v2367_v48, %s1597_s15 }
 0x351   :  { %v717_v3 = vpop.permute.xlu1 %716 }
 0x352   :  { %v2416_v6 = vpop.permute.xlu0 %702  ;;  %v720_v57 = vsel %vm113_vm3, %v717_v3, %v719_v47 }
 0x353   :  { %686 = vrot.lane.b32.xlu1 %v2383_v31, %s1597_s15 }
 0x354   :  { %664 = vrot.lane.b32.xlu2 %v2387_v37, %s1595_s0  ;;  %684 = vrot.lane.b32.xlu0 %v2387_v37, %s1597_s15 }
 0x35b   :  { %696 = vrot.lane.b32.xlu1 %v2307_v23, %s1595_s0 }
 0x35c   :  { %682 = vrot.lane.b32.xlu2 %v2351_v14, %s1597_s15  ;;  %680 = vrot.lane.b32.xlu0 %v2397_v41, %s1597_s15 }
 0x363   :  { %660 = vrot.lane.b32.xlu1 %v2397_v41, %s1595_s0 }
 0x364   :  { %666 = vrot.lane.b32.xlu0 %v2383_v31, %s1595_s0 }
 0x36c   :  { %765 = vperm.xlu0 %1575, %v2412_v60  }
 0x374   :  { %1576 = vset.pattern.permute.xlu0 %v3165_v11 }
 0x396   :  { %v729_v50 = vpop.permute.xlu2 %728 }
 0x39e   :  { %v753_v39 = vpop.permute.xlu2 %752 }
 0x3a6   :  { %v733_v55 = vpop.permute.xlu2 %732 }
 0x3ad   :  { %v2418_v2 = vpop.permute.xlu1 %662 }
 0x3ae   :  { %v749_v20 = vpop.permute.xlu0 %748 }
 0x3b5   :  { %v731_v43 = vpop.permute.xlu1 %730 }
 0x3b6   :  { %v755_v32 = vpop.permute.xlu0 %754  ;;  %v737_v60 = vsel %vm80_vm2, %v731_v43, %v733_v55 }
 0x3b7   :  { %v756_v38 = vsel %vm113_vm3, %v753_v39, %v755_v32  ;;  %v759_v42 = vsel %vm113_vm3, %v755_v32, %v749_v20  ;;  %v742_v32 = vmul.f32 %v737_v60, %v2137_v9 }
 0x3b8   :  { %v762_v10 = vmul.f32 %v2109_v59, %v756_v38  ;;  %v763_v11 = vmul.f32 %v2099_v13, %v759_v42  ;;  %v723_v13 = vsel %vm113_vm3, %v719_v47, %v713_v46  ;;  %v704_v38 = vsel %vm80_vm2, %v701_v22, %v2416_v6 }
 0x3b9   :  { %v710_v22 = vmul.f32 %v705_v49, %v2166_v44 }
 0x3ba   :  { %832 = vmatpush.msrb.mxu2 %v762_v10  ;;  %855 = vmatpush.msrb.mxu3 %v763_v11  ;;  %v726_v11 = vmul.f32 %v720_v57, %v2145_v29  ;;  %v738_v57 = vsel %vm80_vm2, %v729_v50, %v731_v43  ;;  %v722_v43 = vsel %vm113_vm3, %v713_v46, %v2375_v53  ;;  %v2475_v46 = vld [vmem:[%s3161_s1 + $0x98] sm:$0xff] }
 0x3bb   :  { %770 = vperm.xlu2 %1574, %v2475_v46  }
 0x3bc   :  { %833 = vmatpush.msrb.mxu2 %v746_v0  ;;  %856 = vmatpush.msrb.mxu3 %v747_v56 }
 0x3bd   :  { %v735_v14 = vpop.permute.xlu1 %734 }
 0x3be   :  { %v736_v59 = vsel %vm80_vm2, %v733_v55, %v735_v14  ;;  %834 = vmatpush.msrb.mxu2 %v742_v32  ;;  %v751_v10 = vpop.permute.xlu0 %750  ;;  %v724_v55 = vmul.f32 %v722_v43, %v2188_v63 }
 0x3bf   :  { %v757_v12 = vsel %vm113_vm3, %v751_v10, %v753_v39  ;;  %v758_v0 = vsel %vm113_vm3, %v749_v20, %v751_v10  ;;  %v743_v56 = vmul.f32 %v736_v59, %v2140_v45  ;;  %v739_v39 = vsel %vm80_vm2, %v735_v14, %v729_v50  ;;  %v2466_v50 = vpop.permute.xlu2 %664 }
 0x3c0   :  { %835 = vmatpush.msrb.mxu2 %v726_v11  ;;  %v760_v60 = vmul.f32 %v2083_v26, %v758_v0  ;;  %v761_v47 = vmul.f32 %v2104_v52, %v757_v12  ;;  %v727_v20 = vmul.f32 %v723_v13, %v2148_v16  ;;  %v744_v26 = vmul.f32 %v2357_v28, %v2088_v4 }
 0x3c1   :  { %857 = vmatpush.msrb.mxu3 %v743_v56  ;;  %v745_v52 = vmul.f32 %v2367_v48, %v2119_v51  ;;  %v721_v14 = vsel %vm113_vm3, %v2375_v53, %v717_v3  ;;  %v740_v28 = vmul.f32 %v739_v39, %v2178_v17  ;;  %v741_v48 = vmul.f32 %v738_v57, %v2181_v1 }
 0x3c2   :  { %786 = vmatpush.msrb.mxu0 %v760_v60  ;;  %809 = vmatpush.msrb.mxu1 %v761_v47  ;;  %v711_v3 = vmul.f32 %v704_v38, %v2169_v34  ;;  %v725_v32 = vmul.f32 %v721_v14, %v2191_v35  ;;  %v669_v10 = vsel %vm80_vm2, %v2418_v2, %v2466_v50 }
 0x3c3   :  { %836 = vmatpush.msrb.mxu2 %v2327_v62  ;;  %858 = vmatpush.msrb.mxu3 %v727_v20  ;;  %v678_v11 = vmul.f32 %v2387_v37, %v2233_v33  ;;  %v674_v56 = vmul.f32 %v669_v10, %v2250_v61  ;;  %v679_v14 = vmul.f32 %v2383_v31, %v2236_v25  ;;  %v15_v33 = vld [vmem:[%s3161_s1 + $0x18] sm:$0xff] }
 0x3c4   :  { %787 = vmatpush.msrb.mxu0 %v744_v26  ;;  %810 = vmatpush.msrb.mxu1 %v745_v52  ;;  %v3221_v26 = vmov 4  }
 0x3c5   :  { %837 = vmatpush.msrb.mxu2 %v710_v22  ;;  %v687_v53 = vpop.permute.xlu1 %686  ;;  %859 = vmatpush.msrb.mxu3 %v2318_v18  ;;  %v3222_v22 = vld [vmem:[#allocation15_spill] sm:$0xff] }
 0x3c6   :  { %788 = vmatpush.msrb.mxu0 %v740_v28  ;;  %811 = vmatpush.msrb.mxu1 %v741_v48  ;;  %v685_v42 = vpop.permute.xlu0 %684  ;;  %v677_v28 = vmul.f32 %v3222_v22, %v2277_v7 }
 0x3c7   :  { %v688_v13 = vsel %vm113_vm3, %v685_v42, %v687_v53  ;;  %860 = vmatpush.msrb.mxu3 %v711_v3  ;;  %v683_v12 = vpop.permute.xlu2 %682  ;;  %1578 = vset.pattern.permute.xlu2 %v3221_v26 }
 0x3c8   :  { %789 = vmatpush.msrb.mxu0 %v724_v55  ;;  %812 = vmatpush.msrb.mxu1 %v725_v32  ;;  %v694_v59 = vmul.f32 %v688_v13, %v2223_v40  ;;  %v689_v49 = vsel %vm113_vm3, %v683_v12, %v685_v42  ;;  %v3224_v32 = vld [vmem:[#allocation13_spill] sm:$0xff] }
 0x3c9   :  { %v693_v43 = vmul.f32 %v689_v49, %v2271_v8 }
 0x3ca   :  { %790 = vmatpush.msrb.mxu0 %v2307_v23  ;;  %813 = vmatpush.msrb.mxu1 %v2309_v36 }
 0x3cb   :  { %838 = vmatpush.msrb.mxu2 %v694_v59  ;;  %v3225_v59 = vld [vmem:[#allocation12_spill] sm:$0xff] }
 0x3cd   :  { %839 = vmatpush.msrb.mxu2 %v678_v11  ;;  %v697_v0 = vpop.permute.xlu1 %696 }
 0x3ce   :  { %v706_v60 = vsel %vm80_vm2, %v697_v0, %v2347_v5  ;;  %v707_v47 = vsel %vm80_vm2, %v2416_v6, %v697_v0  ;;  %v681_v57 = vpop.permute.xlu0 %680  ;;  %v13_v5 = vld [vmem:[%s3161_s1 + $0x10] sm:$0xff] }
 0x3cf   :  { %840 = vmatpush.msrb.mxu2 %v674_v56  ;;  %v690_v37 = vsel %vm113_vm3, %v681_v57, %v683_v12  ;;  %v691_v39 = vsel %vm113_vm3, %v687_v53, %v681_v57  ;;  %v708_v20 = vmul.f32 %v707_v47, %v2211_v27  ;;  %v709_v38 = vmul.f32 %v706_v60, %v2214_v30 }
 0x3d0   :  { %v695_v6 = vmul.f32 %v691_v39, %v2226_v58  ;;  %v692_v52 = vmul.f32 %v690_v37, %v2268_v54  ;;  %1528 = vmatmul.msk.f32.vlgmr.msrb.gmra.mxu2 %vm544_vm4, %v13_v5 }
 0x3d1   :  { %955 = vmatpush.msra.mxu2 %v2327_v62  ;;  %791 = vmatpush.msrb.mxu0 %v708_v20  ;;  %v676_v62 = vmul.f32 %v2397_v41, %v2274_v21  ;;  %v3223_v41 = vld [vmem:[#allocation14_spill] sm:$0xff] }
 0x3d2   :  { %814 = vmatpush.msrb.mxu1 %v709_v38  ;;  %861 = vmatpush.msrb.mxu3 %v695_v6 }
 0x3d3   :  { %792 = vmatpush.msrb.mxu0 %v692_v52 }
 0x3d4   :  { %815 = vmatpush.msrb.mxu1 %v693_v43  ;;  %862 = vmatpush.msrb.mxu3 %v679_v14 }
 0x3d5   :  { %v661_v48 = vpop.permute.xlu1 %660  ;;  %793 = vmatpush.msrb.mxu0 %v676_v62 }
 0x3d6   :  { %816 = vmatpush.msrb.mxu1 %v677_v28  ;;  %v670_v53 = vsel %vm80_vm2, %v661_v48, %v2418_v2  ;;  %v667_v3 = vpop.permute.xlu0 %666  ;;  %v14_v2 = vld [vmem:[%s3161_s1 + $0x70] sm:$0xff] }
 0x3d7   :  { %v668_v31 = vsel %vm80_vm2, %v2466_v50, %v667_v3  ;;  %v671_v42 = vsel %vm80_vm2, %v667_v3, %v661_v48  ;;  %v673_v55 = vmul.f32 %v670_v53, %v3223_v41 }
 0x3d8   :  { %v672_v13 = vmul.f32 %v671_v42, %v3224_v32  ;;  %v675_v10 = vmul.f32 %v668_v31, %v3225_v59  ;;  %1529 = vmatmul.msk.f32.gmra.mxu2 %vm544_vm4, %v14_v2 }
 0x3d9   :  { %817 = vmatpush.msrb.mxu1 %v673_v55 }
 0x3da   :  { %794 = vmatpush.msrb.mxu0 %v672_v13  ;;  %863 = vmatpush.msrb.mxu3 %v675_v10 }
 0x3db   :  { %1524 = vmatmul.msk.f32.vlgmr.msrb.gmra.mxu0 %vm544_vm4, %v13_v5  ;;  %1526 = vmatmul.msk.f32.vlgmr.msrb.gmra.mxu1 %vm544_vm4, %v13_v5 }
 0x3dc   :  { %1530 = vmatmul.msk.f32.vlgmr.msrb.gmra.mxu3 %vm544_vm4, %v13_v5  ;;  %909 = vmatpush.msra.mxu0 %v2307_v23 }
 0x3dd   :  { %932 = vmatpush.msra.mxu1 %v2309_v36  ;;  %978 = vmatpush.msra.mxu3 %v2318_v18 }
 0x3de   :  { %v766_v50 = vpop.permute.xlu0 %765 }
 0x3e0   :  { %1536 = vmatmul.msk.f32.vlgmr.msra.gmra.mxu2 %vm887_vm5, %v15_v33 }
 0x3e3   :  { %1525 = vmatmul.msk.f32.gmra.mxu0 %vm544_vm4, %v14_v2  ;;  %1527 = vmatmul.msk.f32.gmra.mxu1 %vm544_vm4, %v14_v2 }
 0x3e4   :  { %1531 = vmatmul.msk.f32.gmra.mxu3 %vm544_vm4, %v14_v2 }
 0x3eb   :  { %1532 = vmatmul.msk.f32.vlgmr.msra.gmra.mxu0 %vm887_vm5, %v15_v33  ;;  %1534 = vmatmul.msk.f32.vlgmr.msra.gmra.mxu1 %vm887_vm5, %v15_v33 }
 0x3ec   :  { %1538 = vmatmul.msk.f32.vlgmr.msra.gmra.mxu3 %vm887_vm5, %v15_v33 }
 0x415   :  { %v771_v57 = vpop.permute.xlu2 %770 }
 0x453   :  { %v842_v36 = vpop.f32.mrf.mxu2 }
 0x454   :  { %v843_v60 = vadd.f32 %v842_v36, %v766_v50 }
 0x456   :  { %v2563_v39 = vmax.f32 %v843_v60, 0.0 }
 0x458   :  { %v796_v11 = vpop.f32.mrf.mxu0  ;;  %v819_v12 = vpop.f32.mrf.mxu1  ;;  %3226 = vst [vmem:[#allocation15_spill] sm:$0xff] %v2563_v39 }
 0x459   :  { %v797_v0 = vadd.f32 %v796_v11, %v766_v50  ;;  %v820_v56 = vadd.f32 %v819_v12, %v766_v50 }
 0x45b   :  { %v2547_v49 = vmax.f32 %v797_v0, 0.0  ;;  %v2549_v23 = vmax.f32 %v820_v56, 0.0  ;;  %v845_v43 = vpop.f32.mrf.mxu2 }
 0x45c   :  { %v846_v14 = vadd.f32 %v845_v43, %v771_v57 }
 0x45d   :  { %1014 = vrot.lane.b32.xlu0 %v2549_v23, %s1593_s12  ;;  %986 = vrot.lane.b32.xlu1 %v2547_v49, %s1592_s11 }
 0x45e   :  { %1010 = vrot.lane.b32.xlu2 %v2547_v49, %s1593_s12  ;;  %v2601_v62 = vmax.f32 %v846_v14, 0.0 }
 0x45f   :  { %v865_v18 = vpop.f32.mrf.mxu3 }
 0x460   :  { %v866_v47 = vadd.f32 %v865_v18, %v766_v50  ;;  %v799_v37 = vpop.f32.mrf.mxu0  ;;  %v822_v6 = vpop.f32.mrf.mxu1  ;;  %3228 = vst [vmem:[#allocation13_spill] sm:$0xff] %v2601_v62 }
 0x461   :  { %v800_v38 = vadd.f32 %v799_v37, %v771_v57  ;;  %v823_v26 = vadd.f32 %v822_v6, %v771_v57 }
 0x462   :  { %v2565_v20 = vmax.f32 %v866_v47, 0.0 }
 0x463   :  { %v2573_v5 = vmax.f32 %v800_v38, 0.0  ;;  %v2587_v52 = vmax.f32 %v823_v26, 0.0 }
 0x464   :  { %3227 = vst [vmem:[#allocation14_spill] sm:$0xff] %v2565_v20 }
 0x465   :  { %1110 = vrot.lane.b32.xlu0 %v2549_v23, %s1595_s0  ;;  %1142 = vrot.lane.b32.xlu1 %v2549_v23, %s1597_s15 }
 0x466   :  { %990 = vrot.lane.b32.xlu2 %v2549_v23, %s1592_s11 }
 0x467   :  { %v868_v22 = vpop.f32.mrf.mxu3 }
 0x468   :  { %v869_v28 = vadd.f32 %v868_v22, %v771_v57 }
 0x46a   :  { %v2609_v48 = vmax.f32 %v869_v28, 0.0 }
 0x46c   :  { %3229 = vst [vmem:[#allocation17_spill] sm:$0xff] %v2609_v48 }
 0x46d   :  { %1022 = vrot.lane.b32.xlu0 %v2565_v20, %s1593_s12  ;;  %1018 = vrot.lane.b32.xlu1 %v2563_v39, %s1593_s12 }
 0x46e   :  { %1138 = vrot.lane.b32.xlu2 %v2547_v49, %s1597_s15 }
 0x475   :  { %994 = vrot.lane.b32.xlu0 %v2563_v39, %s1592_s11  ;;  %1012 = vrot.lane.b32.xlu1 %v2573_v5, %s1593_s12 }
 0x476   :  { %1106 = vrot.lane.b32.xlu2 %v2547_v49, %s1595_s0 }
 0x47d   :  { %1118 = vrot.lane.b32.xlu0 %v2565_v20, %s1595_s0  ;;  %988 = vrot.lane.b32.xlu1 %v2573_v5, %s1592_s11 }
 0x47e   :  { %998 = vrot.lane.b32.xlu2 %v2565_v20, %s1592_s11 }
 0x485   :  { %1150 = vrot.lane.b32.xlu0 %v2565_v20, %s1597_s15  ;;  %1144 = vrot.lane.b32.xlu1 %v2587_v52, %s1597_s15 }
 0x486   :  { %1146 = vrot.lane.b32.xlu2 %v2563_v39, %s1597_s15 }
 0x48d   :  { %1108 = vrot.lane.b32.xlu0 %v2573_v5, %s1595_s0  ;;  %1140 = vrot.lane.b32.xlu1 %v2573_v5, %s1597_s15 }
 0x48e   :  { %1016 = vrot.lane.b32.xlu2 %v2587_v52, %s1593_s12 }
 0x495   :  { %996 = vrot.lane.b32.xlu0 %v2601_v62, %s1592_s11  ;;  %1112 = vrot.lane.b32.xlu1 %v2587_v52, %s1595_s0 }
 0x496   :  { %992 = vrot.lane.b32.xlu2 %v2587_v52, %s1592_s11 }
 0x49d   :  { %1120 = vrot.lane.b32.xlu0 %v2609_v48, %s1595_s0  ;;  %1020 = vrot.lane.b32.xlu1 %v2601_v62, %s1593_s12 }
 0x49e   :  { %1024 = vrot.lane.b32.xlu2 %v2609_v48, %s1593_s12 }
 0x4a5   :  { %1000 = vrot.lane.b32.xlu1 %v2609_v48, %s1592_s11 }
 0x4a6   :  { %1148 = vrot.lane.b32.xlu2 %v2601_v62, %s1597_s15 }
 0x4ad   :  { %1152 = vrot.lane.b32.xlu1 %v2609_v48, %s1597_s15 }
 0x4b8   :  { %v1011_v53 = vpop.permute.xlu2 %1010 }
 0x4c0   :  { %v991_v3 = vpop.permute.xlu2 %990 }
 0x4c8   :  { %v1139_v31 = vpop.permute.xlu2 %1138 }
 0x4cf   :  { %v1015_v42 = vpop.permute.xlu0 %1014  ;;  %v987_v55 = vpop.permute.xlu1 %986 }
 0x4d0   :  { %v2623_v13 = vpop.permute.xlu2 %1106  ;;  %v1030_v10 = vsel %vm67_vm1, %v1011_v53, %v1015_v42  ;;  %v2629_v2 = vsel %vm54_vm0, %v987_v55, %v991_v3 }
 0x4d1   :  { %1170 = vrot.lane.b32.xlu2 %v1030_v10, %s1595_s0  ;;  %1078 = vrot.lane.b32.xlu1 %v2629_v2, %s1597_s15 }
 0x4d7   :  { %v2634_v50 = vpop.permute.xlu0 %1110  ;;  %v1143_v11 = vpop.permute.xlu1 %1142 }
 0x4d8   :  { %v2638_v12 = vsel %vm113_vm3, %v1139_v31, %v1143_v11  ;;  %v999_v0 = vpop.permute.xlu2 %998 }
 0x4d9   :  { %1038 = vrot.lane.b32.xlu2 %v2629_v2, %s1595_s0  ;;  %v2665_v14 = vsel %vm54_vm0, %v999_v0, %v987_v55 }
 0x4df   :  { %v1023_v56 = vpop.permute.xlu0 %1022  ;;  %v1019_v36 = vpop.permute.xlu1 %1018 }
 0x4e0   :  { %v2644_v18 = vsel %vm67_vm1, %v1019_v36, %v1023_v56  ;;  %v1147_v60 = vpop.permute.xlu2 %1146  ;;  %v1028_v47 = vsel %vm67_vm1, %v1015_v42, %v1019_v36  ;;  %v2661_v43 = vsel %vm67_vm1, %v1023_v56, %v1011_v53  ;;  %v1202_v53 = vmul.f32 %v1030_v10, %v2088_v4 }
 0x4e1   :  { %v2650_v57 = vsel %vm113_vm3, %v1143_v11, %v1147_v60  ;;  %1174 = vrot.lane.b32.xlu0 %v1028_v47, %s1595_s0  ;;  %1178 = vrot.lane.b32.xlu1 %v2644_v18, %s1595_s0  ;;  %3231 = vst [vmem:[#allocation19_spill] sm:$0xff] %v2661_v43 }
 0x4e7   :  { %v995_v37 = vpop.permute.xlu0 %994  ;;  %v1013_v38 = vpop.permute.xlu1 %1012 }
 0x4e8   :  { %v2657_v6 = vsel %vm54_vm0, %v991_v3, %v995_v37  ;;  %v1017_v26 = vpop.permute.xlu2 %1016  ;;  %v2691_v36 = vsel %vm54_vm0, %v995_v37, %v999_v0 }
 0x4e9   :  { %3230 = vst [vmem:[#allocation18_spill] sm:$0xff] %v2657_v6  ;;  %v1031_v22 = vsel %vm67_vm1, %v1013_v38, %v1017_v26  ;;  %1182 = vrot.lane.b32.xlu0 %v2661_v43, %s1595_s0  ;;  %1082 = vrot.lane.b32.xlu2 %v2657_v6, %s1597_s15 }
 0x4ea   :  { %v1206_v28 = vmul.f32 %v1031_v22, %v2088_v4  ;;  %1034 = vrot.lane.b32.xlu1 %v2665_v14, %s1595_s0  ;;  %3232 = vst [vmem:[#allocation20_spill] sm:$0xff] %v2691_v36 }
 0x4ec   :  { %1257 = vmatpush.msrb.mxu0 %v1206_v28 }
 0x4ee   :  { %1258 = vmatpush.msrb.mxu0 %v1202_v53 }
 0x4ef   :  { %v2677_v3 = vpop.permute.xlu0 %1118  ;;  %v989_v42 = vpop.permute.xlu1 %988 }
 0x4f0   :  { %v993_v55 = vpop.permute.xlu2 %992 }
 0x4f1   :  { %v2681_v11 = vsel %vm54_vm0, %v989_v42, %v993_v55  ;;  %1218 = vrot.lane.b32.xlu2 %v2644_v18, %s1597_s15  ;;  %1074 = vrot.lane.b32.xlu0 %v2665_v14, %s1597_s15 }
 0x4f2   :  { %1080 = vrot.lane.b32.xlu1 %v2681_v11, %s1597_s15 }
 0x4f7   :  { %v1151_v56 = vpop.permute.xlu0 %1150  ;;  %v1145_v4 = vpop.permute.xlu1 %1144 }
 0x4f8   :  { %v2695_v28 = vsel %vm113_vm3, %v1147_v60, %v1151_v56  ;;  %v2699_v53 = vsel %vm113_vm3, %v1151_v56, %v1139_v31  ;;  %v1025_v59 = vpop.permute.xlu2 %1024 }
 0x4f9   :  { %3233 = vst [vmem:[#allocation21_spill] sm:$0xff] %v2699_v53  ;;  %1046 = vrot.lane.b32.xlu2 %v2691_v36, %s1595_s0  ;;  %1172 = vrot.lane.b32.xlu0 %v1031_v22, %s1595_s0  ;;  %v2720_v20 = vsel %vm67_vm1, %v1025_v59, %v1013_v38 }
 0x4fa   :  { %3234 = vst [vmem:[#allocation22_spill] sm:$0xff] %v2720_v20 }
 0x4ff   :  { %v2704_v25 = vpop.permute.xlu0 %1108  ;;  %v1141_v58 = vpop.permute.xlu1 %1140 }
 0x500   :  { %v2708_v0 = vsel %vm113_vm3, %v1141_v58, %v1145_v4  ;;  %v1149_v37 = vpop.permute.xlu2 %1148 }
 0x501   :  { %v2712_v60 = vsel %vm113_vm3, %v1145_v4, %v1149_v37  ;;  %1040 = vrot.lane.b32.xlu0 %v2681_v11, %s1595_s0 }
 0x507   :  { %v997_v31 = vpop.permute.xlu0 %996  ;;  %v2716_v56 = vpop.permute.xlu1 %1112 }
 0x508   :  { %v2724_v34 = vsel %vm54_vm0, %v993_v55, %v997_v31  ;;  %v1203_v55 = vmul.f32 %v1028_v47, %v2119_v51 }
 0x509   :  { %3235 = vst [vmem:[#allocation23_spill] sm:$0xff] %v2724_v34  ;;  %1084 = vrot.lane.b32.xlu2 %v2724_v34, %s1597_s15  ;;  %1184 = vrot.lane.b32.xlu0 %v2720_v20, %s1595_s0 }
 0x50f   :  { %v1021_v4 = vpop.permute.xlu1 %1020 }
 0x510   :  { %v2732_v48 = vsel %vm67_vm1, %v1021_v4, %v1025_v59  ;;  %v1029_v61 = vsel %vm67_vm1, %v1017_v26, %v1021_v4 }
 0x511   :  { %v1207_v38 = vmul.f32 %v1029_v61, %v2119_v51  ;;  %1176 = vrot.lane.b32.xlu1 %v1029_v61, %s1595_s0  ;;  %1210 = vrot.lane.b32.xlu0 %v1030_v10, %s1597_s15 }
 0x512   :  { %1180 = vrot.lane.b32.xlu2 %v2732_v48, %s1595_s0 }
 0x513   :  { %1303 = vmatpush.msrb.mxu2 %v1207_v38 }
 0x515   :  { %1304 = vmatpush.msrb.mxu2 %v1203_v55 }
 0x517   :  { %v1001_v53 = vpop.permute.xlu1 %1000 }
 0x518   :  { %v2744_v59 = vsel %vm54_vm0, %v1001_v53, %v989_v42  ;;  %v2753_v26 = vsel %vm54_vm0, %v997_v31, %v1001_v53 }
 0x519   :  { %1214 = vrot.lane.b32.xlu1 %v1028_v47, %s1597_s15  ;;  %1220 = vrot.lane.b32.xlu0 %v2732_v48, %s1597_s15  ;;  %3236 = vst [vmem:[#allocation24_spill] sm:$0xff] %v2753_v26  ;;  %v3238_v47 = vmov 5  }
 0x51a   :  { %1036 = vrot.lane.b32.xlu2 %v2744_v59, %s1595_s0 }
 0x51f   :  { %v1153_v10 = vpop.permute.xlu1 %1152 }
 0x520   :  { %v2757_v51 = vsel %vm113_vm3, %v1149_v37, %v1153_v10  ;;  %v2761_v42 = vsel %vm113_vm3, %v1153_v10, %v1141_v58  ;;  %v2794_v37 = vpop.permute.xlu0 %1120 }
 0x521   :  { %3237 = vst [vmem:[#allocation25_spill] sm:$0xff] %v2761_v42  ;;  %1212 = vrot.lane.b32.xlu1 %v1031_v22, %s1597_s15  ;;  %1048 = vrot.lane.b32.xlu0 %v2753_v26, %s1595_s0  ;;  %v3239_v22 = vld [vmem:[#allocation16_spill] sm:$0xff] }
 0x522   :  { %1216 = vrot.lane.b32.xlu2 %v1029_v61, %s1597_s15 }
 0x529   :  { %1076 = vrot.lane.b32.xlu1 %v2744_v59, %s1597_s15  ;;  %1088 = vrot.lane.b32.xlu0 %v2753_v26, %s1597_s15 }
 0x52a   :  { %1114 = vrot.lane.b32.xlu2 %v2563_v39, %s1595_s0  ;;  %v1166_v39 = vmul.f32 %v2708_v0, %v2188_v63 }
 0x52b   :  { %v1171_v58 = vpop.permute.xlu2 %1170 }
 0x531   :  { %1116 = vrot.lane.b32.xlu1 %v2601_v62, %s1595_s0  ;;  %1222 = vrot.lane.b32.xlu0 %v2661_v43, %s1597_s15 }
 0x532   :  { %1224 = vrot.lane.b32.xlu2 %v2720_v20, %s1597_s15 }
 0x533   :  { %v2784_v61 = vpop.permute.xlu2 %1038 }
 0x539   :  { %1086 = vrot.lane.b32.xlu1 %v2691_v36, %s1597_s15  ;;  %1247 = vperm.xlu0 %1576, %v2475_v46  }
 0x53a   :  { %1042 = vrot.lane.b32.xlu2 %v2657_v6, %s1595_s0 }
 0x541   :  { %1044 = vrot.lane.b32.xlu1 %v2724_v34, %s1595_s0  ;;  %1580 = vset.pattern.permute.xlu0 %v3238_v47 }
 0x542   :  { %1243 = vperm.xlu2 %1578, %v3239_v22  }
 0x543   :  { %v2790_v53 = vpop.permute.xlu2 %1082  ;;  %v2799_v4 = vpop.permute.xlu1 %1078 }
 0x549   :  { %884 = vperm.xlu1 %1577, %v2475_v46  }
 0x54a   :  { %1579 = vset.pattern.permute.xlu2 %v3238_v47 }
 0x54b   :  { %v2796_v31 = vpop.permute.xlu2 %1218 }
 0x551   :  { %880 = vperm.xlu1 %1577, %v3239_v22  }
 0x553   :  { %v2801_v38 = vpop.permute.xlu0 %1174  ;;  %v2803_v55 = vpop.permute.xlu1 %1178 }
 0x554   :  { %v2805_v10 = vpop.permute.xlu2 %1046 }
 0x55b   :  { %v1183_v36 = vpop.permute.xlu0 %1182 }
 0x55c   :  { %v2810_v46 = vsel %vm80_vm2, %v2803_v55, %v1183_v36  ;;  %v2818_v34 = vpop.permute.xlu1 %1034  ;;  %v1192_v43 = vsel %vm80_vm2, %v1183_v36, %v1171_v58  ;;  %v1162_v36 = vmul.f32 %v2638_v12, %v2188_v63  ;;  %v1129_v63 = vsel %vm80_vm2, %v2794_v37, %v2704_v25 }
 0x55d   :  { %3240 = vst [vmem:[#allocation16_spill] sm:$0xff] %v2810_v46  ;;  %v16_v46 = vld [vmem:[%s3161_s1 + $0x78] sm:$0xff]  ;;  %v1194_v19 = vmul.f32 %v1192_v43, %v2178_v17  ;;  %v1167_v12 = vmul.f32 %v2712_v60, %v2191_v35 }
 0x55e   :  { %1537 = vmatmul.msk.f32.gmra.mxu2 %vm887_vm5, %v16_v46  ;;  %1539 = vmatmul.msk.f32.gmra.mxu3 %vm887_vm5, %v16_v46 }
 0x55f   :  { %1533 = vmatmul.msk.f32.gmra.mxu0 %vm887_vm5, %v16_v46  ;;  %1535 = vmatmul.msk.f32.gmra.mxu1 %vm887_vm5, %v16_v46  ;;  %v1190_v46 = vsel %vm80_vm2, %v1171_v58, %v2801_v38 }
 0x563   :  { %v2812_v47 = vpop.permute.xlu0 %1074  ;;  %v2814_v26 = vpop.permute.xlu2 %1084 }
 0x564   :  { %v2834_v40 = vpop.permute.xlu1 %1080 }
 0x56b   :  { %v1173_v6 = vpop.permute.xlu0 %1172 }
 0x56c   :  { %v2816_v22 = vpop.permute.xlu2 %1180 }
 0x573   :  { %v2823_v42 = vpop.permute.xlu0 %1040 }
 0x574   :  { %v2827_v16 = vpop.permute.xlu2 %1036 }
 0x57b   :  { %v2836_v45 = vpop.permute.xlu0 %1184 }
 0x57c   :  { %3241 = vst [vmem:[#allocation26_spill] sm:$0xff] %v2836_v45  ;;  %v1193_v44 = vsel %vm80_vm2, %v2836_v45, %v1173_v6  ;;  %v1217_v33 = vpop.permute.xlu2 %1216 }
 0x57d   :  { %v1198_v20 = vmul.f32 %v1193_v44, %v2178_v17 }
 0x57f   :  { %1259 = vmatpush.msrb.mxu0 %v1198_v20  ;;  %v1128_v20 = vsel %vm80_vm2, %v2677_v3, %v2623_v13 }
 0x580   :  { %v1130_v43 = vmul.f32 %v1128_v20, %v2211_v27 }
 0x581   :  { %1260 = vmatpush.msrb.mxu0 %v1194_v19 }
 0x583   :  { %v2853_v62 = vpop.permute.xlu1 %1176  ;;  %v2855_v45 = vpop.permute.xlu0 %1210  ;;  %1261 = vmatpush.msrb.mxu0 %v1166_v39  ;;  %v1195_v39 = vmul.f32 %v1190_v46, %v2181_v1 }
 0x584   :  { %v1191_v44 = vsel %vm80_vm2, %v1173_v6, %v2853_v62  ;;  %v2863_v17 = vpop.permute.xlu2 %1114  ;;  %v1134_v6 = vmul.f32 %v1129_v63, %v2211_v27  ;;  %v1586_v27 = vld [vmem:[%s3161_s1 + $0xa8] ss:$0 sm:$0xff] }
 0x585   :  { %v1199_v19 = vmul.f32 %v1191_v44, %v2181_v1  ;;  %1262 = vmatpush.msrb.mxu0 %v1162_v36  ;;  %v2903_v44 = vld [vmem:[%s3161_s1 + $0xb0] ss:$0 sm:$0xff]  ;;  %v2910_v63 = vld [vmem:[%s3161_s1 + $0x28] sm:$0xff] }
 0x587   :  { %1263 = vmatpush.msrb.mxu0 %v2573_v5  ;;  %1305 = vmatpush.msrb.mxu2 %v1199_v19  ;;  %v1163_v5 = vmul.f32 %v2650_v57, %v2191_v35  ;;  %v1127_v35 = vsel %vm80_vm2, %v2704_v25, %v2716_v56  ;;  %v1126_v25 = vsel %vm80_vm2, %v2623_v13, %v2634_v50 }
 0x589   :  { %1264 = vmatpush.msrb.mxu0 %v2547_v49  ;;  %1306 = vmatpush.msrb.mxu2 %v1195_v39  ;;  %v1135_v39 = vmul.f32 %v1127_v35, %v2214_v30 }
 0x58b   :  { %v1215_v0 = vpop.permute.xlu1 %1214  ;;  %v1221_v1 = vpop.permute.xlu0 %1220  ;;  %1265 = vmatpush.msrb.mxu0 %v1134_v6  ;;  %1307 = vmatpush.msrb.mxu2 %v1167_v12  ;;  %v1131_v6 = vmul.f32 %v1126_v25, %v2214_v30 }
 0x58c   :  { %v1228_v58 = vsel %vm113_vm3, %v1215_v0, %v2796_v31  ;;  %v1229_v60 = vsel %vm113_vm3, %v1217_v33, %v1221_v1  ;;  %v2888_v36 = vpop.permute.xlu2 %1224  ;;  %v1230_v13 = vsel %vm113_vm3, %v2855_v45, %v1215_v0  ;;  %v1208_v0 = vmul.f32 %v2732_v48, %v2122_v24 }
 0x58d   :  { %v1239_v49 = vmul.f32 %v1586_v27, %v1229_v60  ;;  %v1227_v46 = vsel %vm113_vm3, %v1221_v1, %v2888_v36  ;;  %1266 = vmatpush.msrb.mxu0 %v1130_v43  ;;  %1308 = vmatpush.msrb.mxu2 %v1163_v5  ;;  %v1235_v57 = vmul.f32 %v1586_v27, %v1228_v58  ;;  %v1588_v1 = vld [vmem:[%s3161_s1 + $0xa0] ss:$0 sm:$0xff]  ;;  %v2946_v60 = vld [vmem:[%s3161_s1 + $0x88] sm:$0xff] }
 0x58e   :  { %v1240_v19 = vmul.f32 %v2903_v44, %v1227_v46  ;;  %v1092_v43 = vsel %vm113_vm3, %v2799_v4, %v2790_v53  ;;  %v1234_v58 = vmul.f32 %v1588_v1, %v1230_v13  ;;  %v1189_v27 = vsel %vm80_vm2, %v2853_v62, %v2816_v22 }
 0x58f   :  { %1340 = vmatpush.msrb.mxu3 %v1239_v49  ;;  %1309 = vmatpush.msrb.mxu2 %v2587_v52  ;;  %v1093_v52 = vsel %vm113_vm3, %v2834_v40, %v2814_v26  ;;  %v1071_v49 = vmul.f32 %v2681_v11, %v2277_v7  ;;  %v1188_v48 = vsel %vm80_vm2, %v2801_v38, %v2803_v55 }
 0x590   :  { %v1103_v30 = vmul.f32 %v1093_v52, %v2271_v8  ;;  %v1055_v46 = vsel %vm80_vm2, %v2827_v16, %v2823_v42  ;;  %v1067_v11 = vmul.f32 %v2629_v2, %v2277_v7  ;;  %v1054_v7 = vsel %vm80_vm2, %v2818_v34, %v2784_v61 }
 0x591   :  { %1341 = vmatpush.msrb.mxu3 %v1235_v57  ;;  %1310 = vmatpush.msrb.mxu2 %v2549_v23  ;;  %v1196_v55 = vmul.f32 %v1188_v48, %v2137_v9  ;;  %v1059_v25 = vmul.f32 %v1054_v7, %v3223_v41 }
 0x592   :  { %1542 = vmatmul.msk.f32.vlgmr.msrb.gmra.mxu3 %vm1250_vm6, %v2910_v63 }
 0x593   :  { %1386 = vmatpush.msra.mxu3 %v1240_v19  ;;  %v1213_v20 = vpop.permute.xlu1 %1212  ;;  %v2922_v12 = vpop.permute.xlu0 %1048  ;;  %1311 = vmatpush.msrb.mxu2 %v1135_v39  ;;  %v1168_v19 = vmul.f32 %v2757_v51, %v2145_v29 }
 0x594   :  { %v1231_v23 = vsel %vm113_vm3, %v1213_v20, %v1217_v33  ;;  %v1099_v33 = vmul.f32 %v1092_v43, %v2271_v8  ;;  %v1204_v8 = vmul.f32 %v2644_v18, %v2122_v24  ;;  %v1094_v24 = vsel %vm113_vm3, %v2812_v47, %v2799_v4  ;;  %v3245_v43 = vld [vmem:[#allocation22_spill] sm:$0xff] }
 0x595   :  { %v1238_v5 = vmul.f32 %v1588_v1, %v1231_v23  ;;  %1312 = vmatpush.msrb.mxu2 %v1131_v6  ;;  %v1200_v18 = vmul.f32 %v1189_v27, %v2137_v9  ;;  %v1063_v4 = vmul.f32 %v1055_v46, %v3223_v41  ;;  %v1098_v57 = vmul.f32 %v1094_v24, %v2268_v54  ;;  %v3000_v9 = vld [vmem:[%s3161_s1 + $0x20] sm:$0xff]  ;;  %v3246_v1 = vld [vmem:[#allocation5_spill] sm:$0xff]  ;;  %v3250_v46 = vld [vmem:[#allocation7_spill] sm:$0xff] }
 0x596   :  { %v1164_v41 = vmul.f32 %v2695_v28, %v2145_v29  ;;  %v1057_v51 = vsel %vm80_vm2, %v2922_v12, %v2827_v16  ;;  %v1066_v28 = vmul.f32 %v2665_v14, %v2274_v21  ;;  %v1056_v16 = vsel %vm80_vm2, %v2805_v10, %v2818_v34  ;;  %v3041_v14 = vld [vmem:[%s3161_s1 + $0x80] sm:$0xff]  ;;  %v3251_v24 = vld [vmem:[#allocation16_spill] sm:$0xff] }
 0x597   :  { %1294 = vmatpush.msrb.mxu1 %v1238_v5  ;;  %1313 = vmatpush.msrb.mxu2 %v1103_v30  ;;  %v1062_v23 = vmul.f32 %v1057_v51, %v3224_v32  ;;  %v1058_v34 = vmul.f32 %v1056_v16, %v3224_v32  ;;  %v3247_v30 = vld [vmem:[#allocation26_spill] sm:$0xff]  ;;  %v3258_v51 = vld [vmem:[#allocation11_spill] sm:$0xff] }
 0x598   :  { %v3261_v16 = vld [vmem:[#allocation14_spill] sm:$0xff] }
 0x599   :  { %1295 = vmatpush.msrb.mxu1 %v1234_v58  ;;  %1314 = vmatpush.msrb.mxu2 %v1099_v33  ;;  %v1187_v58 = vsel %vm80_vm2, %v2816_v22, %v3247_v30  ;;  %v3248_v22 = vld [vmem:[#allocation19_spill] sm:$0xff] }
 0x59a   :  { %1540 = vmatmul.msk.f32.vlgmr.msrb.gmra.mxu1 %vm1250_vm6, %v2910_v63  ;;  %1543 = vmatmul.msk.f32.gmra.mxu3 %vm1250_vm6, %v2946_v60 }
 0x59b   :  { %1349 = vmatpush.msra.mxu1 %v1208_v0  ;;  %v2964_v62 = vpop.permute.xlu1 %1076  ;;  %v2966_v35 = vpop.permute.xlu0 %1088  ;;  %1315 = vmatpush.msrb.mxu2 %v1071_v49 }
 0x59c   :  { %v1095_v38 = vsel %vm113_vm3, %v2964_v62, %v2834_v40  ;;  %v1233_v40 = vsel %vm113_vm3, %v2888_v36, %v1213_v20  ;;  %v1589_v36 = vld [vmem:[%s3161_s1 + $0xb8] ss:$0 sm:$0xff] }
 0x59d   :  { %1350 = vmatpush.msra.mxu1 %v1204_v8  ;;  %v1102_v2 = vmul.f32 %v1095_v38, %v2268_v54  ;;  %1316 = vmatpush.msrb.mxu2 %v1067_v11  ;;  %v1070_v54 = vmul.f32 %v2744_v59, %v2274_v21  ;;  %v1241_v39 = vmul.f32 %v1589_v36, %v1233_v40  ;;  %v3242_v21 = vld [vmem:[#allocation13_spill] sm:$0xff]  ;;  %v3249_v8 = vld [vmem:[#allocation3_spill] sm:$0xff] }
 0x59e   :  { %v1201_v48 = vmul.f32 %v1187_v58, %v3249_v8  ;;  %v3253_v38 = vld [vmem:[#allocation25_spill] sm:$0xff] }
 0x59f   :  { %1351 = vmatpush.msra.mxu1 %v1200_v18  ;;  %1267 = vmatpush.msrb.mxu0 %v1102_v2  ;;  %v1197_v18 = vmul.f32 %v3251_v24, %v3249_v8  ;;  %v1043_v2 = vpop.permute.xlu2 %1042 }
 0x5a0   :  { %1317 = vmatpush.msrb.mxu2 %v1063_v4  ;;  %v3255_v4 = vld [vmem:[#allocation23_spill] sm:$0xff] }
 0x5a1   :  { %1352 = vmatpush.msra.mxu1 %v1196_v55  ;;  %1268 = vmatpush.msrb.mxu0 %v1098_v57  ;;  %v3254_v55 = vld [vmem:[#allocation9_spill] sm:$0xff] }
 0x5a2   :  { %1318 = vmatpush.msrb.mxu2 %v1059_v25  ;;  %1541 = vmatmul.msk.f32.gmra.mxu1 %vm1250_vm6, %v2946_v60  ;;  %v1072_v57 = vmul.f32 %v3255_v4, %v3254_v55 }
 0x5a3   :  { %1353 = vmatpush.msra.mxu1 %v1168_v19  ;;  %1319 = vmatmul.f32.vlgmr.msrb.gmra.mxu2 %v3000_v9  ;;  %v3014_v52 = vpop.permute.xlu1 %1116  ;;  %v1223_v59 = vpop.permute.xlu0 %1222  ;;  %v3256_v19 = vld [vmem:[#allocation21_spill] sm:$0xff] }
 0x5a4   :  { %1269 = vmatpush.msrb.mxu0 %v1070_v54  ;;  %1432 = vmatpush.msra.mxu2 %v1241_v39  ;;  %v1226_v20 = vsel %vm113_vm3, %v2796_v31, %v1223_v59  ;;  %v1232_v29 = vsel %vm113_vm3, %v1223_v59, %v2855_v45  ;;  %v1125_v45 = vsel %vm80_vm2, %v2716_v56, %v3014_v52  ;;  %v3244_v56 = vld [vmem:[#allocation2_spill] sm:$0xff] }
 0x5a5   :  { %v1236_v6 = vmul.f32 %v2903_v44, %v1226_v20  ;;  %v1237_v13 = vmul.f32 %v1589_v36, %v1232_v29  ;;  %1354 = vmatpush.msra.mxu1 %v1164_v41  ;;  %v1124_v31 = vsel %vm80_vm2, %v2634_v50, %v2863_v17  ;;  %v3243_v44 = vld [vmem:[#allocation15_spill] sm:$0xff]  ;;  %v1209_v32 = vmul.f32 %v3245_v43, %v3244_v56  ;;  %v3257_v36 = vld [vmem:[#allocation18_spill] sm:$0xff]  ;;  %v3259_v29 = vld [vmem:[#allocation17_spill] sm:$0xff]  ;;  %v911_v43 = vpop.f32.mrf.mxu0 }
 0x5a6   :  { %1270 = vmatpush.msrb.mxu0 %v1066_v28  ;;  %v1136_v5 = vmul.f32 %v1125_v45, %v3246_v1  ;;  %v1091_v50 = vsel %vm113_vm3, %v2814_v26, %v2966_v35  ;;  %v1132_v33 = vmul.f32 %v1124_v31, %v3246_v1  ;;  %v1205_v49 = vmul.f32 %v3248_v22, %v3244_v56  ;;  %v3265_v45 = vld [vmem:[#allocation20_spill] sm:$0xff]  ;;  %v957_v56 = vpop.f32.mrf.mxu2 }
 0x5a7   :  { %1355 = vmatpush.msra.mxu1 %v3242_v21  ;;  %1387 = vmatpush.msra.mxu3 %v1236_v6  ;;  %v1104_v26 = vmul.f32 %v1091_v50, %v3250_v46  ;;  %v1068_v39 = vmul.f32 %v3257_v36, %v3254_v55  ;;  %v1052_v41 = vsel %vm80_vm2, %v2784_v61, %v1043_v2  ;;  %v3260_v61 = vld [vmem:[#allocation6_spill] sm:$0xff]  ;;  %v1244_v58 = vpop.permute.xlu2 %1243 }
 0x5a8   :  { %1271 = vmatpush.msrb.mxu0 %v1062_v23  ;;  %1433 = vmatpush.msra.mxu2 %v1237_v13  ;;  %v1060_v20 = vmul.f32 %v1052_v41, %v3258_v51  ;;  %v1050_v21 = vsel %vm80_vm2, %v1043_v2, %v2805_v10 }
 0x5a9   :  { %1356 = vmatpush.msra.mxu1 %v3243_v44  ;;  %1544 = vmatmul.msk.f32.vlgmr.msra.gmra.mxu3 %vm1250_vm6, %v2910_v63 }
 0x5aa   :  { %1272 = vmatpush.msrb.mxu0 %v1058_v34  ;;  %v3266_v34 = vld [vmem:[#allocation12_spill] sm:$0xff] }
 0x5ab   :  { %1273 = vmatmul.f32.vlgmr.msrb.gmra.mxu0 %v3000_v9  ;;  %1322 = vmatmul.f32.gmra.mxu2 %v3041_v14  ;;  %v1087_v0 = vpop.permute.xlu1 %1086  ;;  %v1061_v44 = vmul.f32 %v1050_v21, %v3266_v34 }
 0x5ac   :  { %1357 = vmatpush.msra.mxu1 %v1136_v5  ;;  %1395 = vmatpush.msra.mxu0 %v1209_v32  ;;  %v1090_v27 = vsel %vm113_vm3, %v2790_v53, %v1087_v0  ;;  %v3252_v53 = vld [vmem:[#allocation4_spill] sm:$0xff]  ;;  %v934_v32 = vpop.f32.mrf.mxu1 }
 0x5ad   :  { %v1100_v11 = vmul.f32 %v1090_v27, %v3250_v46  ;;  %v1169_v7 = vmul.f32 %v3253_v38, %v3252_v53  ;;  %v1165_v25 = vmul.f32 %v3256_v19, %v3252_v53 }
 0x5ae   :  { %1358 = vmatpush.msra.mxu1 %v1132_v33  ;;  %1396 = vmatpush.msra.mxu0 %v1205_v49 }
 0x5b0   :  { %1359 = vmatpush.msra.mxu1 %v1104_v26  ;;  %1397 = vmatpush.msra.mxu0 %v1201_v48 }
 0x5b1   :  { %1545 = vmatmul.msk.f32.gmra.mxu3 %vm1250_vm6, %v2946_v60 }
 0x5b2   :  { %1360 = vmatpush.msra.mxu1 %v1100_v11  ;;  %1398 = vmatpush.msra.mxu0 %v1197_v18  ;;  %v1248_v11 = vpop.permute.xlu0 %1247 }
 0x5b3   :  { %1276 = vmatmul.f32.gmra.mxu0 %v3041_v14  ;;  %v1045_v40 = vpop.permute.xlu1 %1044  ;;  %1546 = vmatmul.msk.f32.vlgmr.msra.gmra.mxu2 %vm1250_vm6, %v2910_v63  ;;  %v1123_v63 = vsel %vm80_vm2, %v3014_v52, %v2794_v37  ;;  %v1097_v37 = vsel %vm113_vm3, %v2966_v35, %v2964_v62  ;;  %v3263_v62 = vld [vmem:[#allocation10_spill] sm:$0xff]  ;;  %v3264_v35 = vld [vmem:[#allocation24_spill] sm:$0xff] }
 0x5b4   :  { %1361 = vmatpush.msra.mxu1 %v1072_v57  ;;  %1399 = vmatpush.msra.mxu0 %v1169_v7  ;;  %v1053_v54 = vsel %vm80_vm2, %v2823_v42, %v1045_v40  ;;  %v1122_v42 = vsel %vm80_vm2, %v2863_v17, %v2677_v3  ;;  %v1137_v28 = vmul.f32 %v1123_v63, %v3260_v61  ;;  %v3262_v17 = vld [vmem:[#allocation8_spill] sm:$0xff] }
 0x5b5   :  { %v1064_v59 = vmul.f32 %v1053_v54, %v3258_v51  ;;  %v1133_v52 = vmul.f32 %v1122_v42, %v3260_v61  ;;  %v1096_v3 = vsel %vm113_vm3, %v1087_v0, %v2812_v47  ;;  %v1105_v6 = vmul.f32 %v1097_v37, %v3262_v17 }
 0x5b6   :  { %1362 = vmatpush.msra.mxu1 %v1068_v39  ;;  %1400 = vmatpush.msra.mxu0 %v1165_v25  ;;  %v1101_v13 = vmul.f32 %v1096_v3, %v3262_v17  ;;  %v1073_v23 = vmul.f32 %v3264_v35, %v3263_v62  ;;  %v1069_v47 = vmul.f32 %v3265_v45, %v3263_v62 }
 0x5b8   :  { %1401 = vmatpush.msra.mxu0 %v3259_v29  ;;  %1363 = vmatpush.msra.mxu1 %v1064_v59 }
 0x5ba   :  { %1402 = vmatpush.msra.mxu0 %v3261_v16  ;;  %1364 = vmatpush.msra.mxu1 %v1060_v20 }
 0x5bb   :  { %1365 = vmatmul.f32.vlgmr.msra.gmra.mxu1 %v3000_v9  ;;  %1547 = vmatmul.msk.f32.gmra.mxu2 %vm1250_vm6, %v2946_v60  ;;  %v1051_v60 = vsel %vm80_vm2, %v1045_v40, %v2922_v12  ;;  %v980_v12 = vpop.f32.mrf.mxu3  ;;  %v3134_v1 = vpop.permute.xlu1 %884 }
 0x5bc   :  { %1403 = vmatpush.msra.mxu0 %v1137_v28  ;;  %v1065_v31 = vmul.f32 %v1051_v60, %v3266_v34 }
 0x5be   :  { %1404 = vmatpush.msra.mxu0 %v1133_v52 }
 0x5c0   :  { %1405 = vmatpush.msra.mxu0 %v1105_v6 }
 0x5c2   :  { %1406 = vmatpush.msra.mxu0 %v1101_v13 }
 0x5c3   :  { %1368 = vmatmul.f32.gmra.mxu1 %v3041_v14  ;;  %v881_v50 = vpop.permute.xlu1 %880 }
 0x5c4   :  { %1407 = vmatpush.msra.mxu0 %v1073_v23  ;;  %v935_v27 = vadd.f32 %v934_v32, %v881_v50  ;;  %v912_v48 = vadd.f32 %v911_v43, %v881_v50  ;;  %v958_v52 = vadd.f32 %v957_v56, %v881_v50  ;;  %v981_v13 = vadd.f32 %v980_v12, %v881_v50 }
 0x5c6   :  { %1408 = vmatpush.msra.mxu0 %v1069_v47 }
 0x5c8   :  { %1409 = vmatpush.msra.mxu0 %v1065_v31 }
 0x5ca   :  { %1410 = vmatpush.msra.mxu0 %v1061_v44 }
 0x5cb   :  { %1411 = vmatmul.f32.vlgmr.msra.gmra.mxu0 %v3000_v9 }
 0x5d3   :  { %1414 = vmatmul.f32.gmra.mxu0 %v3041_v14 }
 0x5dc   :  { %v914_v10 = vpop.f32.mrf.mxu0  ;;  %v937_v30 = vpop.f32.mrf.mxu1 }
 0x5dd   :  { %v938_v38 = vadd.f32 %v937_v30, %v3134_v1  ;;  %v915_v54 = vadd.f32 %v914_v10, %v3134_v1 }
 0x5e1   :  { %v983_v5 = vpop.f32.mrf.mxu3  ;;  %v960_v15 = vpop.f32.mrf.mxu2 }
 0x5e2   :  { %v961_v31 = vadd.f32 %v960_v15, %v3134_v1  ;;  %v984_v32 = vadd.f32 %v983_v5, %v3134_v1  ;;  %v25_v15 = vld [vmem:[%s3161_s1 + $0x98] sm:$0x3] }
 0x615   :  { %v1343_v0 = vpop.f32.mrf.mxu3 }
 0x617   :  { %v1297_v9 = vpop.f32.mrf.mxu1 }
 0x61d   :  { %v1346_v53 = vpop.f32.mrf.mxu3 }
 0x61f   :  { %v1300_v25 = vpop.f32.mrf.mxu1 }
 0x626   :  { %v1320_v33 = vpop.f32.mrf.mxu2 }
 0x627   :  { %v1321_v22 = vadd.f32 %v1320_v33, %v1244_v58 }
 0x628   :  { %v1274_v49 = vpop.f32.mrf.mxu0 }
 0x629   :  { %v1275_v8 = vadd.f32 %v1274_v49, %v1244_v58  ;;  %v1344_v14 = vadd.f32 %v1343_v0, %v1321_v22  ;;  %v1590_v0 = vld [vmem:[%s3161_s1 + $0x38] sm:$0xff] }
 0x62b   :  { %v1298_v46 = vadd.f32 %v1297_v9, %v1275_v8  ;;  %v1442_v26 = vadd.f32 %v1344_v14, %v935_v27  ;;  %v21_v14 = vld [vmem:[%s3161_s1 + $0x30] sm:$0xff] }
 0x62c   :  { %v1389_v29 = vpop.f32.mrf.mxu3 }
 0x62d   :  { %v1441_v24 = vadd.f32 %v1298_v46, %v912_v48  ;;  %v1450_v2 = vmax.f32 %v1442_v26, 0.0  ;;  %v22_v48 = vld [vmem:[%s3161_s1 + $0x90] sm:$0x3] }
 0x62e   :  { %v1323_v18 = vpop.f32.mrf.mxu2 }
 0x62f   :  { %v1449_v7 = vmax.f32 %v1441_v24, 0.0  ;;  %v1324_v55 = vadd.f32 %v1323_v18, %v1248_v11 }
 0x630   :  { %v1277_v4 = vpop.f32.mrf.mxu0 }
 0x631   :  { %v1278_v57 = vadd.f32 %v1277_v4, %v1248_v11  ;;  %v1347_v40 = vadd.f32 %v1346_v53, %v1324_v55  ;;  %v1457_v19 = vadd.f32 %v1450_v2, %v1449_v7 }
 0x633   :  { %v1301_v36 = vadd.f32 %v1300_v25, %v1278_v57  ;;  %v1446_v39 = vadd.f32 %v1347_v40, %v938_v38  ;;  %1458 = vadd.xlane.f32.xlu1 %v1457_v19 }
 0x634   :  { %v1392_v35 = vpop.f32.mrf.mxu3 }
 0x635   :  { %v1445_v41 = vadd.f32 %v1301_v36, %v915_v54  ;;  %v1454_v59 = vmax.f32 %v1446_v39, 0.0 }
 0x636   :  { %v1435_v61 = vpop.f32.mrf.mxu2 }
 0x637   :  { %v1453_v51 = vmax.f32 %v1445_v41, 0.0 }
 0x638   :  { %v1366_v20 = vpop.f32.mrf.mxu1 }
 0x639   :  { %v1460_v63 = vadd.f32 %v1454_v59, %v1453_v51  ;;  %v1367_v42 = vadd.f32 %v1366_v20, %v1244_v58 }
 0x63b   :  { %1461 = vadd.xlane.f32.xlu2 %v1460_v63  ;;  %v1390_v28 = vadd.f32 %v1389_v29, %v1367_v42 }
 0x63d   :  { %v1443_v17 = vadd.f32 %v1390_v28, %v958_v52 }
 0x63e   :  { %v1438_v34 = vpop.f32.mrf.mxu2 }
 0x63f   :  { %v1451_v60 = vmax.f32 %v1443_v17, 0.0 }
 0x640   :  { %v1369_v16 = vpop.f32.mrf.mxu1 }
 0x641   :  { %v1370_v6 = vadd.f32 %v1369_v16, %v1248_v11 }
 0x643   :  { %v1393_v45 = vadd.f32 %v1392_v35, %v1370_v6 }
 0x645   :  { %v1447_v10 = vadd.f32 %v1393_v45, %v961_v31 }
 0x648   :  { %v1412_v37 = vpop.f32.mrf.mxu0 }
 0x649   :  { %v1413_v3 = vadd.f32 %v1412_v37, %v1244_v58  ;;  %v1455_v58 = vmax.f32 %v1447_v10, 0.0 }
 0x64b   :  { %v1436_v62 = vadd.f32 %v1435_v61, %v1413_v3 }
 0x64d   :  { %v1444_v23 = vadd.f32 %v1436_v62, %v981_v13 }
 0x64f   :  { %v1452_v47 = vmax.f32 %v1444_v23, 0.0 }
 0x650   :  { %v1415_v21 = vpop.f32.mrf.mxu0 }
 0x651   :  { %v1416_v44 = vadd.f32 %v1415_v21, %v1248_v11  ;;  %v1463_v43 = vadd.f32 %v1452_v47, %v1451_v60 }
 0x653   :  { %v1439_v56 = vadd.f32 %v1438_v34, %v1416_v44  ;;  %1464 = vadd.xlane.f32.xlu2 %v1463_v43 }
 0x655   :  { %v1448_v30 = vadd.f32 %v1439_v56, %v984_v32 }
 0x657   :  { %v1456_v12 = vmax.f32 %v1448_v30, 0.0 }
 0x659   :  { %v1466_v50 = vadd.f32 %v1456_v12, %v1455_v58 }
 0x65b   :  { %1467 = vadd.xlane.f32.xlu0 %v1466_v50 }
 0x66b   :  { %1475 = vperm.xlu2 %1579, %v1590_v0  }
 0x66f   :  { %1480 = vperm.xlu0 %1580, %v25_v15  }
 0x6a6   :  { %v1459_v5 = vpop.xlane.xlu1 %1458 }
 0x6ae   :  { %v1462_v33 = vpop.xlane.xlu2 %1461 }
 0x6c6   :  { %v1465_v1 = vpop.xlane.xlu2 %1464 }
 0x6c7   :  { %v1470_v22 = vsel %vm1469_vm7, %v1459_v5, %v1465_v1 }
 0x6c8   :  { %v1472_v8 = vmul.f32 0.00390625, %v1470_v22 }
 0x6ce   :  { %v1468_v27 = vpop.xlane.xlu0 %1467  ;;  %v1476_v46 = vpop.permute.xlu2 %1475 }
 0x6cf   :  { %v1471_v49 = vsel %vm1469_vm7, %v1462_v33, %v1468_v27 }
 0x6d0   :  { %v1473_v9 = vmul.f32 0.00390625, %v1471_v49 }
 0x6d2   :  { %1503 = vmatpush.msrb.mxu3 %v1473_v9 }
 0x6d4   :  { %1504 = vmatpush.msrb.mxu3 %v1472_v8 }
 0x6d5   :  { %1548 = vmatmul.msk.f32.vlgmr.msrb.gmra.mxu3 %vm1250_vm6, %v21_v14 }
 0x6dd   :  { %1549 = vmatmul.msk.f32.gmra.mxu3 %vm1250_vm6, %v22_v48 }
 0x6e1   :  { %v1481_v24 = vpop.permute.xlu0 %1480 }
 0x758   :  { %v1506_v26 = vpop.f32.mrf.mxu3 }
 0x759   :  { %v1507_v11 = vadd.f32 %v1506_v26, %v1476_v46 }
 0x75b   :  { %1513 = vst.msk [vmem:[%s3162_s2] sm:$0xff] %vm1512_vm8, %v1507_v11 }
 0x760   :  { %v1509_v18 = vpop.f32.mrf.mxu3 }
 0x761   :  { %v1510_v53 = vadd.f32 %v1509_v18, %v1481_v24 }
 0x763   :  { %1515 = vst.msk [vmem:[%s3162_s2 + $0x8] sm:$0x3] %vm1514_vm9, %v1510_v53 }

</bundles_post_ra>
